<compile_context>
chip_gen: v5e
topology: v5e:2x2
jax: 0.10.0
libtpu: 0.0.40
codegen_flags: <defaults>
</compile_context>

<pallas_src>
import functools

import jax
import jax.numpy as jnp
import numpy as np
from jax.experimental import pallas as pl
from jax.experimental.pallas import tpu as pltpu


def _upsample_conv_kernel(x_ref, w_ref, b_ref, o_ref):
    """Fused nearest-2x upsample + 3x3 conv; NHWC row strip, one grid step.

    x_ref: (1, 1, TH+2, W+2, Cin)  bf16 zero-padded row strip (original res)
    w_ref: (4, 4*Cin, TCO)         bf16 folded 2x2-tap weights, phase-major
    b_ref: (1, TCO)                f32 bias
    o_ref: (1, 4, TH, W, TCO)      phase-decomposed output, phase p = 2a+b
    """
    th, wd, tco = o_ref.shape[2], o_ref.shape[3], o_ref.shape[4]
    k4 = w_ref.shape[1]

    # Tap-concatenated operand, built ONCE per grid step; every output phase
    # is a window of it, so each phase is a single MXU matmul with K = 4*Cin
    # (no per-tap accumulator read-modify-write, no per-tap window copies).
    t00 = x_ref[0, 0, 0:th + 1, 0:wd + 1, :]
    t01 = x_ref[0, 0, 0:th + 1, 1:wd + 2, :]
    t10 = x_ref[0, 0, 1:th + 2, 0:wd + 1, :]
    t11 = x_ref[0, 0, 1:th + 2, 1:wd + 2, :]
    taps = jnp.concatenate([t00, t01, t10, t11], axis=-1)   # (TH+1, W+1, 4Cin)

    bias = b_ref[...]                                        # (1, TCO) f32

    for a in range(2):          # output row phase
        for b in range(2):      # output col phase
            p = 2 * a + b
            win = taps[a:a + th, b:b + wd, :].reshape(th * wd, k4)
            # bf16 operands, f32 accumulation: single MXU pass.
            acc = jnp.dot(win, w_ref[p], preferred_element_type=jnp.float32)
            acc = acc + bias
            o_ref[0, p] = acc.reshape(th, wd, tco).astype(o_ref.dtype)


def _chip_vmem_bytes():
    """Physical per-core VMEM (conservative v7x default if query fails)."""
    phys = 64 * 1024 * 1024
    try:
        info = pltpu.get_tpu_info()
        phys = int(getattr(info, "vmem_capacity_bytes", phys))
    except Exception:
        pass
    return phys


def upsample_nearest2x_conv3x3(x, weight, bias, *, row_block=None,
                               cout_block=None):
    """x: (N, C, H, W) f32, weight: (Cout, Cin, 3, 3) OIHW, bias: (Cout,)."""
    N, Cin, H, W = x.shape
    Cout = weight.shape[0]

    # Fold the nearest-2x upsample into the 3x3 conv.  For output phase a
    # (rows) the 3 kernel rows collapse onto 2 original-resolution taps:
    #   a=0: x[i-1] <- w[0],        x[i]   <- w[1]+w[2]
    #   a=1: x[i]   <- w[0]+w[1],   x[i+1] <- w[2]
    # (same along columns with phase b).
    A = jnp.array([[[1., 0., 0.], [0., 1., 1.]],
                   [[1., 1., 0.], [0., 0., 1.]]], dtype=jnp.float32)
    w_eff = jnp.einsum('ask,btl,oikl->abstio', A, A, weight.astype(jnp.float32),
                       precision=jax.lax.Precision.HIGHEST)
    # (4 phases, (s,t,ci) = 4*Cin, Cout) — matches the kernel's concat order.
    w_flat = w_eff.reshape(4, 4 * Cin, Cout)

    # Lane-dense output stores: pad Cout up to a multiple of 128 when it is
    # large but unaligned (small channel counts stay unpadded — padding to 128
    # there would multiply HBM traffic for no gain).
    Cout_p = Cout
    bias_p = bias
    if Cout > 128 and Cout % 128 != 0:
        Cout_p = ((Cout + 127) // 128) * 128
        w_flat = jnp.pad(w_flat, ((0, 0), (0, 0), (0, Cout_p - Cout)))
        bias_p = jnp.pad(bias, (0, Cout_p - Cout))

    # Chip-aware knobs: v7x-class (64 MiB VMEM) -> tco <= 128, ~48 MiB limit;
    # v5e/v6e (128 MiB) -> tco <= 256, ~96 MiB limit.
    phys = _chip_vmem_bytes()
    big_vmem = phys >= 100 * 1024 * 1024
    vmem_limit = min((phys * 3) // 4, 96 * 1024 * 1024)

    if cout_block is not None:
        tco = int(cout_block)
        assert Cout_p % tco == 0 and (tco % 128 == 0 or tco == Cout_p)
    elif Cout_p % 128 == 0:
        tco = min(Cout_p, 256 if big_vmem else 128)
    else:
        tco = Cout_p
    n_co = Cout_p // tco

    # H row-strip tiling: largest divisor of H whose (double-buffered) blocks
    # plus in-kernel temporaries fit the VMEM budget.
    def _blk_bytes(th_):
        i_blk = (th_ + 2) * (W + 2) * Cin * 2            # bf16 input strip
        w_blk = 4 * 4 * Cin * tco * 2                    # bf16 folded weights
        o_blk = 4 * th_ * W * tco * 4                    # f32 phase output
        y_tmp = (th_ + 1) * (W + 1) * 4 * Cin * 2        # tap-concat operand
        p_tmp = th_ * W * (4 * Cin * 2 + tco * 4)        # per-phase win + acc
        return 2 * (i_blk + w_blk + o_blk) + y_tmp + p_tmp

    if row_block is not None:
        th = int(row_block)
        assert H % th == 0
    else:
        budget = int(vmem_limit * 0.8)
        th = 1
        for d in range(1, H + 1):
            if H % d == 0 and _blk_bytes(d) <= budget:
                th = d
    n_h = H // th

    # NHWC + 1-pixel halo + halo'd row strips, all in one XLA input pass.
    # TODO(synk): the zero pad could be folded into the kernel (masked edge
    # taps) to shave this pass; input is only 1/4 of the output traffic.
    x_nhwc = jnp.transpose(x, (0, 2, 3, 1)).astype(jnp.bfloat16)
    x_pad = jnp.pad(x_nhwc, ((0, 0), (1, 1), (1, 1), (0, 0)))
    if n_h == 1:
        x_strips = x_pad[:, None]                        # (N, 1, H+2, W+2, Cin)
    else:
        x_strips = jnp.stack(
            [x_pad[:, h * th:h * th + th + 2] for h in range(n_h)], axis=1)

    w_bf16 = w_flat.astype(jnp.bfloat16)
    b2 = bias_p.reshape(1, Cout_p).astype(jnp.float32)

    # Grid (cout_block, image, row_strip): the folded weight block (the
    # largest re-readable operand, 16*Cin*Cout) stays resident across the
    # inner axes; the (4x smaller) input strip is the one re-fetched.
    grid_spec = pltpu.PrefetchScalarGridSpec(
        num_scalar_prefetch=0,
        grid=(n_co, N, n_h),
        in_specs=[
            pl.BlockSpec((1, 1, th + 2, W + 2, Cin),
                         lambda c, n, h: (n, h, 0, 0, 0)),
            pl.BlockSpec((4, 4 * Cin, tco), lambda c, n, h: (0, 0, c)),
            pl.BlockSpec((1, tco), lambda c, n, h: (0, c)),
        ],
        out_specs=pl.BlockSpec((1, 4, th, W, tco),
                               lambda c, n, h: (n, 0, h, 0, c)),
    )
    out = pl.pallas_call(
        _upsample_conv_kernel,
        grid_spec=grid_spec,
        out_shape=jax.ShapeDtypeStruct((N, 4, H, W, Cout_p), x.dtype),
        compiler_params=pltpu.CompilerParams(
            dimension_semantics=("parallel", "parallel", "parallel"),
            vmem_limit_bytes=int(vmem_limit)),
    )(x_strips, w_bf16, b2)

    if Cout_p != Cout:
        out = out[..., :Cout]
    # out[n, 2a+b, i, j, co] = y[n, co, 2i+a, 2j+b].  A single transpose both
    # interleaves the phases and converts NHWC -> the NCHW interface (exactly
    # one post-kernel HBM pass; an NHWC consumer could skip it entirely).
    out = out.reshape(N, 2, 2, H, W, Cout)
    y = out.transpose(0, 5, 3, 1, 4, 2)                  # (N, Cout, H, 2, W, 2)
    return y.reshape(N, Cout, 2 * H, 2 * W)


def upsample_nearest2x(x):
    # Pure nearest-2x resize is a memory-layout op; left to XLA (one
    # HBM-roofline pass), per the earlier perf review.
    return jnp.repeat(jnp.repeat(x, 2, axis=2), 2, axis=3)


class Upsample:
    """JAX/Pallas port of guided_diffusion Upsample (dims=2)."""

    def __init__(self, channels, use_conv, dims=2, *, key=None):
        assert dims == 2, "only dims=2 implemented"
        # TODO(synk): dims=1 and dims=3 variants not implemented (dims=2 only).
        self.channels = channels
        self.use_conv = use_conv
        if use_conv:
            key = jax.random.PRNGKey(42) if key is None else key
            kw, kb = jax.random.split(key)
            fan_in = channels * 3 * 3
            bound = 1.0 / np.sqrt(fan_in)
            self.weight = jax.random.uniform(
                kw, (channels, channels, 3, 3), jnp.float32, -bound, bound)
            self.bias = jax.random.uniform(
                kb, (channels,), jnp.float32, -bound, bound)

    def __call__(self, x, **tiling):
        assert x.shape[1] == self.channels
        if self.use_conv:
            return upsample_nearest2x_conv3x3(x, self.weight, self.bias,
                                              **tiling)
        return upsample_nearest2x(x)


def _reference(x, weight, bias, use_conv):
    x_up = jnp.repeat(jnp.repeat(x, 2, axis=2), 2, axis=3)
    if not use_conv:
        return x_up
    y = jax.lax.conv_general_dilated(
        x_up, weight, window_strides=(1, 1), padding="SAME",
        dimension_numbers=("NCHW", "OIHW", "NCHW"),
        precision=jax.lax.Precision.HIGHEST)
    return y + bias[None, :, None, None]


if __name__ == "__main__":
    # bf16 MXU operands (per perf review) -> relaxed tolerance vs f32 reference.
    TOL = 3e-2

    # Config 1: small default path (single strip, single Cout block).
    N, C, H, W = 2, 4, 16, 16
    x = jax.random.normal(jax.random.PRNGKey(0), (N, C, H, W), jnp.float32)
    mod = Upsample(C, use_conv=True)
    y = jax.block_until_ready(mod(x))
    y_ref = _reference(x, mod.weight, mod.bias, use_conv=True)
    np.testing.assert_allclose(np.asarray(y), np.asarray(y_ref),
                               rtol=TOL, atol=TOL)

    # Config 2: exercise row strips, Cout padding (192 -> 256), Cout tiling
    # (tco=128, n_co=2) and the weights-resident grid order.
    N2, C2, H2, W2 = 1, 192, 16, 16
    x2 = jax.random.normal(jax.random.PRNGKey(1), (N2, C2, H2, W2), jnp.float32)
    mod2 = Upsample(C2, use_conv=True, key=jax.random.PRNGKey(2))
    y2 = jax.block_until_ready(
        upsample_nearest2x_conv3x3(x2, mod2.weight, mod2.bias,
                                   row_block=8, cout_block=128))
    y2_ref = _reference(x2, mod2.weight, mod2.bias, use_conv=True)
    np.testing.assert_allclose(np.asarray(y2), np.asarray(y2_ref),
                               rtol=TOL, atol=TOL)

    # use_conv=False (pure nearest upsample, handled by XLA).
    mod_nc = Upsample(C, use_conv=False)
    y3 = jax.block_until_ready(mod_nc(x))
    y3_ref = _reference(x, None, None, use_conv=False)
    np.testing.assert_allclose(np.asarray(y3), np.asarray(y3_ref),
                               rtol=0, atol=0)

    print("KERNEL_OK")
</pallas_src>

<mosaic_0001>
module attributes {stable_mosaic.version = 11 : i64} {
  func.func @_upsample_conv_kernel(%arg0: i32, %arg1: i32, %arg2: i32, %arg3: memref<1x1x18x18x4xbf16, #tpu.memory_space<vmem>>, %arg4: memref<4x16x4xbf16, #tpu.memory_space<vmem>>, %arg5: memref<1x4xf32, #tpu.memory_space<vmem>>, %arg6: memref<1x4x16x16x4xf32, #tpu.memory_space<vmem>>) attributes {dimension_semantics = [#tpu.dimension_semantics<parallel>, #tpu.dimension_semantics<parallel>, #tpu.dimension_semantics<parallel>], iteration_bounds = array<i64: 1, 2, 1>, scalar_prefetch = 0 : i64, scratch_operands = 0 : i64, tpu.core_type = #tpu.core_type<tc>, window_params = [{transform_indices = @transform_0, window_bounds = array<i64: 1, 1, 18, 18, 4>}, {transform_indices = @transform_1, window_bounds = array<i64: 4, 16, 4>}, {transform_indices = @transform_2, window_bounds = array<i64: 1, 4>}, {transform_indices = @transform_3, window_bounds = array<i64: 1, 4, 16, 16, 4>}]} {
    %c0 = arith.constant 0 : index
    %c0_0 = arith.constant 0 : index
    %c0_1 = arith.constant 0 : index
    %c0_2 = arith.constant 0 : index
    %c0_3 = arith.constant 0 : index
    %0 = vector.load %arg3[%c0, %c0_0, %c0_1, %c0_2, %c0_3] : memref<1x1x18x18x4xbf16, #tpu.memory_space<vmem>>, vector<1x1x17x17x4xbf16>
    %1 = vector.shape_cast %0 : vector<1x1x17x17x4xbf16> to vector<17x17x4xbf16>
    %c0_4 = arith.constant 0 : index
    %c0_5 = arith.constant 0 : index
    %c0_6 = arith.constant 0 : index
    %c1 = arith.constant 1 : index
    %c0_7 = arith.constant 0 : index
    %2 = vector.load %arg3[%c0_4, %c0_5, %c0_6, %c1, %c0_7] : memref<1x1x18x18x4xbf16, #tpu.memory_space<vmem>>, vector<1x1x17x17x4xbf16>
    %3 = vector.shape_cast %2 : vector<1x1x17x17x4xbf16> to vector<17x17x4xbf16>
    %c0_8 = arith.constant 0 : index
    %c0_9 = arith.constant 0 : index
    %c1_10 = arith.constant 1 : index
    %c0_11 = arith.constant 0 : index
    %c0_12 = arith.constant 0 : index
    %4 = vector.load %arg3[%c0_8, %c0_9, %c1_10, %c0_11, %c0_12] : memref<1x1x18x18x4xbf16, #tpu.memory_space<vmem>>, vector<1x1x17x17x4xbf16>
    %5 = vector.shape_cast %4 : vector<1x1x17x17x4xbf16> to vector<17x17x4xbf16>
    %c0_13 = arith.constant 0 : index
    %c0_14 = arith.constant 0 : index
    %c1_15 = arith.constant 1 : index
    %c1_16 = arith.constant 1 : index
    %c0_17 = arith.constant 0 : index
    %6 = vector.load %arg3[%c0_13, %c0_14, %c1_15, %c1_16, %c0_17] : memref<1x1x18x18x4xbf16, #tpu.memory_space<vmem>>, vector<1x1x17x17x4xbf16>
    %7 = vector.shape_cast %6 : vector<1x1x17x17x4xbf16> to vector<17x17x4xbf16>
    %8 = tpu.concatenate %1, %3, %5, %7 in 2 : vector<17x17x4xbf16>, vector<17x17x4xbf16>, vector<17x17x4xbf16>, vector<17x17x4xbf16> -> vector<17x17x16xbf16>
    %c0_18 = arith.constant 0 : index
    %c0_19 = arith.constant 0 : index
    %9 = vector.load %arg5[%c0_18, %c0_19] : memref<1x4xf32, #tpu.memory_space<vmem>>, vector<1x4xf32>
    %10 = vector.extract_strided_slice %8 {offsets = [0, 0, 0], sizes = [16, 16, 16], strides = [1, 1, 1]} : vector<17x17x16xbf16> to vector<16x16x16xbf16>
    %11 = vector.shape_cast %10 : vector<16x16x16xbf16> to vector<256x16xbf16>
    %c0_20 = arith.constant 0 : index
    %c0_21 = arith.constant 0 : index
    %c0_22 = arith.constant 0 : index
    %12 = vector.load %arg4[%c0_20, %c0_21, %c0_22] : memref<4x16x4xbf16, #tpu.memory_space<vmem>>, vector<1x16x4xbf16>
    %13 = vector.shape_cast %12 : vector<1x16x4xbf16> to vector<16x4xbf16>
    %cst = arith.constant dense<0.000000e+00> : vector<256x4xf32>
    %14 = tpu.matmul %11, %13, %cst {dimension_numbers = #tpu.dot_dimension_numbers<[1], [0], [0], [1], [0, 0, 1, 1], [], []>} : vector<256x16xbf16>, vector<16x4xbf16>, vector<256x4xf32> -> vector<256x4xf32>
    %15 = vector.broadcast %9 : vector<1x4xf32> to vector<256x4xf32>
    %16 = arith.addf %14, %15 : vector<256x4xf32>
    %17 = vector.shape_cast %16 : vector<256x4xf32> to vector<16x16x4xf32>
    %c0_23 = arith.constant 0 : index
    %c0_24 = arith.constant 0 : index
    %c0_25 = arith.constant 0 : index
    %c0_26 = arith.constant 0 : index
    %c0_27 = arith.constant 0 : index
    %18 = vector.load %arg6[%c0_23, %c0_24, %c0_25, %c0_26, %c0_27] : memref<1x4x16x16x4xf32, #tpu.memory_space<vmem>>, vector<1x1x16x16x4xf32>
    %19 = vector.shape_cast %18 : vector<1x1x16x16x4xf32> to vector<16x16x4xf32>
    %20 = vector.shape_cast %17 : vector<16x16x4xf32> to vector<1x1x16x16x4xf32>
    tpu.vector_store %arg6[%c0_23, %c0_24, %c0_25, %c0_26, %c0_27], %20 {strides = array<i32>} : memref<1x4x16x16x4xf32, #tpu.memory_space<vmem>>, vector<1x1x16x16x4xf32>,
    %21 = vector.extract_strided_slice %8 {offsets = [0, 1, 0], sizes = [16, 16, 16], strides = [1, 1, 1]} : vector<17x17x16xbf16> to vector<16x16x16xbf16>
    %22 = vector.shape_cast %21 : vector<16x16x16xbf16> to vector<256x16xbf16>
    %c1_28 = arith.constant 1 : index
    %c0_29 = arith.constant 0 : index
    %c0_30 = arith.constant 0 : index
    %23 = vector.load %arg4[%c1_28, %c0_29, %c0_30] : memref<4x16x4xbf16, #tpu.memory_space<vmem>>, vector<1x16x4xbf16>
    %24 = vector.shape_cast %23 : vector<1x16x4xbf16> to vector<16x4xbf16>
    %cst_31 = arith.constant dense<0.000000e+00> : vector<256x4xf32>
    %25 = tpu.matmul %22, %24, %cst_31 {dimension_numbers = #tpu.dot_dimension_numbers<[1], [0], [0], [1], [0, 0, 1, 1], [], []>} : vector<256x16xbf16>, vector<16x4xbf16>, vector<256x4xf32> -> vector<256x4xf32>
    %26 = vector.broadcast %9 : vector<1x4xf32> to vector<256x4xf32>
    %27 = arith.addf %25, %26 : vector<256x4xf32>
    %28 = vector.shape_cast %27 : vector<256x4xf32> to vector<16x16x4xf32>
    %c0_32 = arith.constant 0 : index
    %c1_33 = arith.constant 1 : index
    %c0_34 = arith.constant 0 : index
    %c0_35 = arith.constant 0 : index
    %c0_36 = arith.constant 0 : index
    %29 = vector.load %arg6[%c0_32, %c1_33, %c0_34, %c0_35, %c0_36] : memref<1x4x16x16x4xf32, #tpu.memory_space<vmem>>, vector<1x1x16x16x4xf32>
    %30 = vector.shape_cast %29 : vector<1x1x16x16x4xf32> to vector<16x16x4xf32>
    %31 = vector.shape_cast %28 : vector<16x16x4xf32> to vector<1x1x16x16x4xf32>
    tpu.vector_store %arg6[%c0_32, %c1_33, %c0_34, %c0_35, %c0_36], %31 {strides = array<i32>} : memref<1x4x16x16x4xf32, #tpu.memory_space<vmem>>, vector<1x1x16x16x4xf32>,
    %32 = vector.extract_strided_slice %8 {offsets = [1, 0, 0], sizes = [16, 16, 16], strides = [1, 1, 1]} : vector<17x17x16xbf16> to vector<16x16x16xbf16>
    %33 = vector.shape_cast %32 : vector<16x16x16xbf16> to vector<256x16xbf16>
    %c2 = arith.constant 2 : index
    %c0_37 = arith.constant 0 : index
    %c0_38 = arith.constant 0 : index
    %34 = vector.load %arg4[%c2, %c0_37, %c0_38] : memref<4x16x4xbf16, #tpu.memory_space<vmem>>, vector<1x16x4xbf16>
    %35 = vector.shape_cast %34 : vector<1x16x4xbf16> to vector<16x4xbf16>
    %cst_39 = arith.constant dense<0.000000e+00> : vector<256x4xf32>
    %36 = tpu.matmul %33, %35, %cst_39 {dimension_numbers = #tpu.dot_dimension_numbers<[1], [0], [0], [1], [0, 0, 1, 1], [], []>} : vector<256x16xbf16>, vector<16x4xbf16>, vector<256x4xf32> -> vector<256x4xf32>
    %37 = vector.broadcast %9 : vector<1x4xf32> to vector<256x4xf32>
    %38 = arith.addf %36, %37 : vector<256x4xf32>
    %39 = vector.shape_cast %38 : vector<256x4xf32> to vector<16x16x4xf32>
    %c0_40 = arith.constant 0 : index
    %c2_41 = arith.constant 2 : index
    %c0_42 = arith.constant 0 : index
    %c0_43 = arith.constant 0 : index
    %c0_44 = arith.constant 0 : index
    %40 = vector.load %arg6[%c0_40, %c2_41, %c0_42, %c0_43, %c0_44] : memref<1x4x16x16x4xf32, #tpu.memory_space<vmem>>, vector<1x1x16x16x4xf32>
    %41 = vector.shape_cast %40 : vector<1x1x16x16x4xf32> to vector<16x16x4xf32>
    %42 = vector.shape_cast %39 : vector<16x16x4xf32> to vector<1x1x16x16x4xf32>
    tpu.vector_store %arg6[%c0_40, %c2_41, %c0_42, %c0_43, %c0_44], %42 {strides = array<i32>} : memref<1x4x16x16x4xf32, #tpu.memory_space<vmem>>, vector<1x1x16x16x4xf32>,
    %43 = vector.extract_strided_slice %8 {offsets = [1, 1, 0], sizes = [16, 16, 16], strides = [1, 1, 1]} : vector<17x17x16xbf16> to vector<16x16x16xbf16>
    %44 = vector.shape_cast %43 : vector<16x16x16xbf16> to vector<256x16xbf16>
    %c3 = arith.constant 3 : index
    %c0_45 = arith.constant 0 : index
    %c0_46 = arith.constant 0 : index
    %45 = vector.load %arg4[%c3, %c0_45, %c0_46] : memref<4x16x4xbf16, #tpu.memory_space<vmem>>, vector<1x16x4xbf16>
    %46 = vector.shape_cast %45 : vector<1x16x4xbf16> to vector<16x4xbf16>
    %cst_47 = arith.constant dense<0.000000e+00> : vector<256x4xf32>
    %47 = tpu.matmul %44, %46, %cst_47 {dimension_numbers = #tpu.dot_dimension_numbers<[1], [0], [0], [1], [0, 0, 1, 1], [], []>} : vector<256x16xbf16>, vector<16x4xbf16>, vector<256x4xf32> -> vector<256x4xf32>
    %48 = vector.broadcast %9 : vector<1x4xf32> to vector<256x4xf32>
    %49 = arith.addf %47, %48 : vector<256x4xf32>
    %50 = vector.shape_cast %49 : vector<256x4xf32> to vector<16x16x4xf32>
    %c0_48 = arith.constant 0 : index
    %c3_49 = arith.constant 3 : index
    %c0_50 = arith.constant 0 : index
    %c0_51 = arith.constant 0 : index
    %c0_52 = arith.constant 0 : index
    %51 = vector.load %arg6[%c0_48, %c3_49, %c0_50, %c0_51, %c0_52] : memref<1x4x16x16x4xf32, #tpu.memory_space<vmem>>, vector<1x1x16x16x4xf32>
    %52 = vector.shape_cast %51 : vector<1x1x16x16x4xf32> to vector<16x16x4xf32>
    %53 = vector.shape_cast %50 : vector<16x16x4xf32> to vector<1x1x16x16x4xf32>
    tpu.vector_store %arg6[%c0_48, %c3_49, %c0_50, %c0_51, %c0_52], %53 {strides = array<i32>} : memref<1x4x16x16x4xf32, #tpu.memory_space<vmem>>, vector<1x1x16x16x4xf32>,
    return
  }
  func.func @transform_0(%arg0: i32, %arg1: i32, %arg2: i32) -> (i32, i32, i32, i32, i32) {
    %c0_i32 = arith.constant 0 : i32
    %c0_i32_0 = arith.constant 0 : i32
    %c0_i32_1 = arith.constant 0 : i32
    %c0_i32_2 = arith.constant 0 : i32
    return %arg1, %arg2, %c0_i32, %c0_i32_0, %c0_i32_1 : i32, i32, i32, i32, i32
  }
  func.func @transform_1(%arg0: i32, %arg1: i32, %arg2: i32) -> (i32, i32, i32) {
    %c0_i32 = arith.constant 0 : i32
    %c0_i32_0 = arith.constant 0 : i32
    %c0_i32_1 = arith.constant 0 : i32
    return %c0_i32, %c0_i32_0, %arg0 : i32, i32, i32
  }
  func.func @transform_2(%arg0: i32, %arg1: i32, %arg2: i32) -> (i32, i32) {
    %c0_i32 = arith.constant 0 : i32
    %c0_i32_0 = arith.constant 0 : i32
    return %c0_i32, %arg0 : i32, i32
  }
  func.func @transform_3(%arg0: i32, %arg1: i32, %arg2: i32) -> (i32, i32, i32, i32, i32) {
    %c0_i32 = arith.constant 0 : i32
    %c0_i32_0 = arith.constant 0 : i32
    %c0_i32_1 = arith.constant 0 : i32
    return %arg1, %c0_i32, %arg2, %c0_i32_0, %arg0 : i32, i32, i32, i32, i32
  }
}

</mosaic_0001>

<bundles_post_ra>
// kernel: tpu_custom_call.1
= control target key start
LH: loop header
LB: loop body
LE: loop exit
PB: predicated region body
PF: predicated region fallthrough
CT: control target
= control target key end

     0   :  { %s2935_s12 = smov 0   ;;  %s2937_s13 = smov 0   ;;  %s4039_s0 = inlined_call_operand.vmem [shape: bf16[2,1,18,18,4], index: 0, kind: input, shape index: {}]   ;;  %s4040_s1 = inlined_call_operand.vmem [shape: bf16[4,16,4], index: 1, kind: input, shape index: {}]   ;;  %s4041_s2 = inlined_call_operand.vmem [shape: f32[1,4], index: 2, kind: input, shape index: {}]   ;;  %s4042_s3 = inlined_call_operand.vmem [shape: f32[2,4,16,16,4], index: 3, kind: output, shape index: {}]  }
   0x1   :  { %s2939_s14 = smov 0  }
   0x2 LB: > { %s28_s15 = sadd.s32 1, %s2906_s13  ;;  %p2444_p0 = scmp.ge.s32.totalorder %s2910_s14, 1  ;;  %s2910_s14 = sphi %s2939_s14, %s13_s14   ;;  %s2906_s13 = sphi %s2937_s13, %s4044_s13   ;;  %s2902_s12 = sphi %s2935_s12, %s4043_s12  }
   0x3   : > { %p30_p1 = scmp.ge.s32.totalorder %s28_s15, 2  ;;  %p183_p2 = scmp.lt.s32.totalorder %s2910_s14, 3 }
   0x5   : > { %s4046_s15 = smov (%p30_p1, %s28_s15), 0  ;;  %p184_p3 = pnand %p2444_p0, %p183_p2 }
   0x6   : > { %p226_p4 = scmp.lt.s32.totalorder (!%p184_p3), %s2902_s12, 1  ;;  %s2912_s20 = smov (!%p184_p3), 8  }
   0x7   : > { %187 = sbr.rel (%p184_p3) target bundleno = 548 (0x224), region = 32  ;;  %s2913_s21 = smov (!%p184_p3), 4  }
   0x8   : > { %s2914_s22 = smov (!%p184_p3), 12  }
   0xc   : > { %s4048_s12 = smov (!%p226_p4, %s2902_s12), 1  ;;  %vm496_vm0 = vsmask.f32 7424  ;;  %vm1313_vm1 = vcmask 31744   ;;  %vm1382_vm2 = vcmask 64512   ;;  %vm1451_vm3 = vcmask 97280  }
   0xd   : > { %s2858_s16 = smul.u32 216, %s4048_s12  ;;  %vm1532_vm4 = vcmask 130048   ;;  %s2819_s4 = sshll.u32 %s4048_s12, 10 }
   0xe   : > { %s3545_s9 = scalar_lea.vmem %s4042_s3, %s2819_s4 }
   0xf   : > { %s2959_s19 = scalar_lea.vmem %s4039_s0, %s2858_s16 }
  0x10   : > { %v2838_v0 = vld [vmem:[%s2959_s19 + $0x18] sm:$0xff]  ;;  %v2837_v1 = vld [vmem:[%s2959_s19 + $0xc] sm:$0xff]  ;;  %v262_v2 = vld [vmem:[%s2959_s19 + $0x14] sm:$0x1] }
  0x11   : > { %v416_v3 = vunpack.c.l.b16 %v262_v2  ;;  %v2965_v4 = vld [vmem:[%s2959_s19 + $0xc] sm:$0xff]  ;;  %v2453_v5 = vld [vmem:[%s2959_s19 + $0x20] sm:$0x1]  ;;  %943 = vrot.lane.b32.xlu0 %v2838_v0, %s2912_s20  ;;  %v1024_v7 = vshll.u32 %v2838_v0, 16  ;;  %939 = vrot.lane.b32.xlu1 %v2837_v1, %s2912_s20  ;;  %v1022_v15 = vshrl.u32 %v2838_v0, 16  ;;  %v1010_v31 = vshll.u32 %v2837_v1, 16 }
  0x12   : > { %v2969_v6 = vld [vmem:[%s2959_s19] sm:$0xff]  ;;  %v859_v8 = vunpack.c.l.b16 %v2453_v5  ;;  %v259_v9 = vld [vmem:[%s2959_s19 + $0x8] sm:$0x1]  ;;  %v512_v11 = vshrl.u32 %v2965_v4, 16  ;;  %v514_v12 = vshll.u32 %v2965_v4, 16  ;;  %v1008_v39 = vshrl.u32 %v2837_v1, 16 }
  0x13   : > { %v2974_v10 = vpack.c.b16 %v416_v3, %v416_v3  ;;  %v413_v13 = vunpack.c.l.b16 %v259_v9  ;;  %v500_v16 = vshll.u32 %v2969_v6, 16  ;;  %v2450_v17 = vld [vmem:[%s2959_s19 + $0x14] sm:$0x1]  ;;  %v1026_v20 = vrot.slane %v1024_v7, 1  ;;  %v265_v38 = vld [vmem:[%s2959_s19 + $0x20] sm:$0x1] }
  0x14   : > { %v908_v14 = vpack.c.b16 %v859_v8, %v859_v8  ;;  %v516_v18 = vrot.slane %v514_v12, 1  ;;  %v498_v24 = vshrl.u32 %v2969_v6, 16  ;;  %v856_v29 = vunpack.c.l.b16 %v2450_v17  ;;  %v2995_v44 = vld [vmem:[%s2959_s19 + $0x18] sm:$0xff]  ;;  %v2456_v51 = vld [vmem:[%s2959_s19 + $0x2c] sm:$0x1]  ;;  %v2839_v54 = vld [vmem:[%s2959_s19 + $0x24] sm:$0xff] }
  0x15   : > { %v519_v19 = vshll.u32 %v2974_v10, 16  ;;  %v2981_v21 = vpack.c.b16 %v413_v13, %v413_v13  ;;  %v523_v22 = vshrl.u32 %v2974_v10, 16  ;;  %v502_v25 = vrot.slane %v500_v16, 1  ;;  %v268_v63 = vld [vmem:[%s2959_s19 + $0x2c] sm:$0x1]  ;;  %v3015_v5 = vld [vmem:[%s2959_s19 + $0x24] sm:$0xff] }
  0x16   : > { %v1029_v23 = vshll.u32 %v908_v14, 16  ;;  %945 = vrot.lane.b32.xlu2 %v908_v14, %s2912_s20  ;;  %v517_v26 = vor.u32 %v516_v18, %v512_v11  ;;  %v1027_v32 = vor.u32 %v1026_v20, %v1022_v15  ;;  %v906_v36 = vpack.c.b16 %v856_v29, %v856_v29  ;;  %v2840_v17 = vld [vmem:[%s2959_s19 + $0x30] sm:$0xff] }
  0x17   : > { %v521_v27 = vrot.slane %v519_v19, 1  ;;  %v505_v28 = vshll.u32 %v2981_v21, 16  ;;  %v503_v34 = vor.u32 %v502_v25, %v498_v24  ;;  %v1033_v37 = vshrl.u32 %v908_v14, 16  ;;  %v2459_v14 = vld [vmem:[%s2959_s19 + $0x38] sm:$0x1] }
  0x18   : > { %v1031_v33 = vrot.slane %v1029_v23, 1  ;;  %v1012_v40 = vrot.slane %v1010_v31, 1  ;;  %v1015_v43 = vshll.u32 %v906_v36, 16  ;;  %v419_v45 = vunpack.c.l.b16 %v265_v38 }
  0x19   : > { %v522_v30 = vsel %vm496_vm0, %v517_v26, %v521_v27  ;;  %741 = vrot.lane.b32.xlu1 %v523_v22, %s2913_s21  ;;  %v507_v35 = vrot.slane %v505_v28, 1  ;;  %v509_v46 = vshrl.u32 %v2981_v21, 16  ;;  %v528_v50 = vshll.u32 %v2995_v44, 16  ;;  %v271_v27 = vld [vmem:[%s2959_s19 + $0x38] sm:$0x1] }
  0x1a   : > { %739 = vrot.lane.b32.xlu0 %v522_v30, %s2913_s21  ;;  %v1032_v41 = vsel %vm496_vm0, %v1027_v32, %v1031_v33  ;;  %v1013_v47 = vor.u32 %v1012_v40, %v1008_v39  ;;  %v1017_v48 = vrot.slane %v1015_v43, 1  ;;  %v3000_v49 = vpack.c.b16 %v419_v45, %v419_v45  ;;  %v3035_v32 = vld [vmem:[%s2959_s19 + $0x30] sm:$0xff]  ;;  %v2462_v39 = vld [vmem:[%s2959_s19 + $0x44] sm:$0x1]  ;;  %v2841_v40 = vld [vmem:[%s2959_s19 + $0x3c] sm:$0xff] }
  0x1b   : > { %v508_v42 = vsel %vm496_vm0, %v503_v34, %v507_v35  ;;  %v526_v52 = vshrl.u32 %v2995_v44, 16  ;;  %v530_v55 = vrot.slane %v528_v50, 1  ;;  %v862_v57 = vunpack.c.l.b16 %v2456_v51 }
  0x1c   : > { %v1018_v53 = vsel %vm496_vm0, %v1013_v47, %v1017_v48  ;;  %v533_v56 = vshll.u32 %v3000_v49, 16  ;;  %v1019_v58 = vshrl.u32 %v906_v36, 16  ;;  %v1038_v59 = vshll.u32 %v2839_v54, 16 }
  0x1d   : > { %v531_v60 = vor.u32 %v530_v55, %v526_v52  ;;  %v910_v62 = vpack.c.b16 %v862_v57, %v862_v57  ;;  %v1036_v0 = vshrl.u32 %v2839_v54, 16  ;;  %v422_v7 = vunpack.c.l.b16 %v268_v63 }
  0x1e   : > { %1251 = vrot.lane.b32.xlu2 %v1033_v37, %s2914_s22  ;;  %v535_v61 = vrot.slane %v533_v56, 1  ;;  %v1040_v2 = vrot.slane %v1038_v59, 1  ;;  %v537_v8 = vshrl.u32 %v3000_v49, 16  ;;  %v542_v13 = vshll.u32 %v3015_v5, 16 }
  0x1f   : > { %v1043_v3 = vshll.u32 %v910_v62, 16  ;;  %v3020_v12 = vpack.c.b16 %v422_v7, %v422_v7  ;;  %v540_v15 = vshrl.u32 %v3015_v5, 16  ;;  %v865_v20 = vunpack.c.l.b16 %v2459_v14 }
  0x20   : > { %v536_v1 = vsel %vm496_vm0, %v531_v60, %v535_v61  ;;  %v1041_v9 = vor.u32 %v1040_v2, %v1036_v0  ;;  %v544_v18 = vrot.slane %v542_v13, 1  ;;  %v1047_v22 = vshrl.u32 %v910_v62, 16 }
  0x21   : > { %1249 = vrot.lane.b32.xlu1 %v1032_v41, %s2914_s22  ;;  %v1045_v11 = vrot.slane %v1043_v3, 1  ;;  %v547_v19 = vshll.u32 %v3020_v12, 16  ;;  %v1052_v23 = vshll.u32 %v2840_v17, 16  ;;  %v912_v26 = vpack.c.b16 %v865_v20, %v865_v20  ;;  %v2842_v3 = vld [vmem:[%s2959_s19 + $0x48] sm:$0xff] }
  0x22   : > { %735 = vrot.lane.b32.xlu0 %v508_v42, %s2913_s21  ;;  %v545_v24 = vor.u32 %v544_v18, %v540_v15  ;;  %v1050_v28 = vshrl.u32 %v2840_v17, 16  ;;  %v425_v33 = vunpack.c.l.b16 %v271_v27  ;;  %v551_v34 = vshrl.u32 %v3020_v12, 16  ;;  %v277_v18 = vld [vmem:[%s2959_s19 + $0x50] sm:$0x1] }
  0x23   : > { %v1046_v16 = vsel %vm496_vm0, %v1041_v9, %v1045_v11  ;;  %v549_v25 = vrot.slane %v547_v19, 1  ;;  %v1054_v30 = vrot.slane %v1052_v23, 1  ;;  %v1057_v31 = vshll.u32 %v912_v26, 16  ;;  %v3073_v19 = vld [vmem:[%s2959_s19 + $0x48] sm:$0xff] }
  0x24   : > { %v3040_v37 = vpack.c.b16 %v425_v33, %v425_v33  ;;  %v556_v38 = vshll.u32 %v3035_v32, 16  ;;  %v868_v41 = vunpack.c.l.b16 %v2462_v39  ;;  %v554_v43 = vshrl.u32 %v3035_v32, 16 }
  0x25   : > { %v550_v29 = vsel %vm496_vm0, %v545_v24, %v549_v25  ;;  %v1055_v35 = vor.u32 %v1054_v30, %v1050_v28  ;;  %v1066_v47 = vshll.u32 %v2841_v40, 16  ;;  %v1061_v50 = vshrl.u32 %v912_v26, 16 }
  0x26   : > { %737 = vrot.lane.b32.xlu2 %v509_v46, %s2913_s21  ;;  %v558_v45 = vrot.slane %v556_v38, 1  ;;  %v561_v46 = vshll.u32 %v3040_v37, 16  ;;  %v914_v48 = vpack.c.b16 %v868_v41, %v868_v41  ;;  %v1080_v14 = vshll.u32 %v2842_v3, 16  ;;  %v2843_v38 = vld [vmem:[%s2959_s19 + $0x54] sm:$0xff] }
  0x27   : > { %v1068_v55 = vrot.slane %v1066_v47, 1  ;;  %v431_v20 = vunpack.c.l.b16 %v277_v18  ;;  %v1078_v23 = vshrl.u32 %v2842_v3, 16  ;;  %v584_v27 = vshll.u32 %v3073_v19, 16 }
  0x28   : > { %v559_v51 = vor.u32 %v558_v45, %v554_v43  ;;  %v563_v52 = vrot.slane %v561_v46, 1  ;;  %v1071_v56 = vshll.u32 %v914_v48, 16  ;;  %v1075_v13 = vshrl.u32 %v914_v48, 16  ;;  %v280_v46 = vld [vmem:[%s2959_s19 + $0x5c] sm:$0x1] }
  0x29   : > { %941 = vrot.lane.b32.xlu1 %v906_v36, %s2912_s20  ;;  %v1059_v36 = vrot.slane %v1057_v31, 1  ;;  %v1082_v24 = vrot.slane %v1080_v14, 1  ;;  %v2468_v31 = vld [vmem:[%s2959_s19 + $0x5c] sm:$0x1]  ;;  %v582_v33 = vshrl.u32 %v3073_v19, 16  ;;  %v1094_v43 = vshll.u32 %v2843_v38, 16 }
  0x2a   : > { %1245 = vrot.lane.b32.xlu0 %v1018_v53, %s2914_s22  ;;  %v274_v53 = vld [vmem:[%s2959_s19 + $0x44] sm:$0x1]  ;;  %v564_v57 = vsel %vm496_vm0, %v559_v51, %v563_v52  ;;  %v1073_v61 = vrot.slane %v1071_v56, 1  ;;  %v874_v39 = vunpack.c.l.b16 %v2468_v31  ;;  %v3095_v52 = vld [vmem:[%s2959_s19 + $0x54] sm:$0xff] }
  0x2b   : > { %v1060_v42 = vsel %vm496_vm0, %v1055_v35, %v1059_v36  ;;  %v428_v59 = vunpack.c.l.b16 %v274_v53  ;;  %v434_v53 = vunpack.c.l.b16 %v280_v46 }
  0x2c   : > { %v918_v45 = vpack.c.b16 %v874_v39, %v874_v39 }
  0x2d   : > { %v3060_v63 = vpack.c.b16 %v428_v59, %v428_v59 }
  0x2e   : > { %1247 = vrot.lane.b32.xlu2 %v1019_v58, %s2914_s22  ;;  %v3055_v58 = vld [vmem:[%s2959_s19 + $0x3c] sm:$0xff]  ;;  %v1099_v51 = vshll.u32 %v918_v45, 16 }
  0x2f   : > { %v570_v0 = vshll.u32 %v3055_v58, 16  ;;  %v568_v7 = vshrl.u32 %v3055_v58, 16  ;;  %v575_v9 = vshll.u32 %v3060_v63, 16  ;;  %v579_v28 = vshrl.u32 %v3060_v63, 16 }
  0x30   : > { %v1101_v59 = vrot.slane %v1099_v51, 1 }
  0x31   : > { %947 = vrot.lane.b32.xlu1 %v2839_v54, %s2912_s20  ;;  %v1064_v54 = vshrl.u32 %v2841_v40, 16 }
  0x32   : > { %743 = vrot.lane.b32.xlu0 %v536_v1, %s2913_s21  ;;  %v2465_v1 = vld [vmem:[%s2959_s19 + $0x50] sm:$0x1] }
  0x33   : > { %v1069_v60 = vor.u32 %v1068_v55, %v1064_v54  ;;  %v871_v11 = vunpack.c.l.b16 %v2465_v1  ;;  %v2856_v55 = vld [vmem:[%s4040_s1 + $0x10] sm:$0xff] }
  0x34   : > { %2043 = vmatpush.bf16.msra.mxu2 %v2856_v55 }
  0x35   : > { %v1074_v2 = vsel %vm496_vm0, %v1069_v60, %v1073_v61  ;;  %v3105_v60 = vpack.c.b16 %v434_v53, %v434_v53  ;;  %v598_v61 = vshll.u32 %v3095_v52, 16 }
  0x36   : > { %745 = vrot.lane.b32.xlu2 %v537_v8, %s2913_s21  ;;  %v572_v8 = vrot.slane %v570_v0, 1  ;;  %v2844_v0 = vld [vmem:[%s2959_s19 + $0x60] sm:$0xff] }
  0x37   : > { %v1108_v14 = vshll.u32 %v2844_v0, 16 }
  0x38   : > { %v573_v15 = vor.u32 %v572_v8, %v568_v7  ;;  %v600_v7 = vrot.slane %v598_v61, 1  ;;  %v603_v8 = vshll.u32 %v3105_v60, 16 }
  0x39   : > { %949 = vrot.lane.b32.xlu1 %v910_v62, %s2912_s20  ;;  %v565_v62 = vshrl.u32 %v3040_v37, 16 }
  0x3a   : > { %1253 = vrot.lane.b32.xlu0 %v1046_v16, %s2914_s22  ;;  %v577_v16 = vrot.slane %v575_v9, 1  ;;  %v605_v18 = vrot.slane %v603_v8, 1 }
  0x3e   : > { %1255 = vrot.lane.b32.xlu2 %v1047_v22, %s2914_s22  ;;  %v578_v22 = vsel %vm496_vm0, %v573_v15, %v577_v16  ;;  %v1103_v16 = vshrl.u32 %v918_v45, 16 }
  0x41   : > { %951 = vrot.lane.b32.xlu1 %v2840_v17, %s2912_s20  ;;  %v916_v17 = vpack.c.b16 %v871_v11, %v871_v11  ;;  %v2857_v11 = vld [vmem:[%s4040_s1 + $0x18] sm:$0xff] }
  0x42   : > { %747 = vrot.lane.b32.xlu0 %v550_v29, %s2913_s21  ;;  %v1083_v29 = vor.u32 %v1082_v24, %v1078_v23  ;;  %2187 = vmatpush.bf16.msra.mxu3 %v2857_v11  ;;  %v1110_v23 = vrot.slane %v1108_v14, 1 }
  0x43   : > { %v1085_v25 = vshll.u32 %v916_v17, 16 }
  0x45   : > { %v1087_v30 = vrot.slane %v1085_v25, 1 }
  0x46   : > { %749 = vrot.lane.b32.xlu2 %v551_v34, %s2913_s21  ;;  %v586_v34 = vrot.slane %v584_v27, 1  ;;  %v3128_v27 = vld [vmem:[%s2959_s19 + $0x60] sm:$0xff] }
  0x47   : > { %v1088_v36 = vsel %vm496_vm0, %v1083_v29, %v1087_v30  ;;  %v2855_v30 = vld [vmem:[%s4040_s1 + $0x8] sm:$0xff] }
  0x48   : > { %1910 = vmatpush.bf16.msra.mxu1 %v2855_v30 }
  0x49   : > { %953 = vrot.lane.b32.xlu1 %v912_v26, %s2912_s20  ;;  %v3079_v26 = vpack.c.b16 %v431_v20, %v431_v20  ;;  %v283_v20 = vld [vmem:[%s2959_s19 + $0x68] sm:$0x1] }
  0x4a   : > { %1257 = vrot.lane.b32.xlu0 %v1060_v42, %s2914_s22  ;;  %v1089_v42 = vshrl.u32 %v916_v17, 16 }
  0x4b   : > { %v589_v35 = vshll.u32 %v3079_v26, 16  ;;  %v593_v56 = vshrl.u32 %v3079_v26, 16 }
  0x4d   : > { %v591_v41 = vrot.slane %v589_v35, 1 }
  0x4e   : > { %1259 = vrot.lane.b32.xlu2 %v1061_v50, %s2914_s22  ;;  %v1096_v50 = vrot.slane %v1094_v43, 1  ;;  %v610_v43 = vshrl.u32 %v3128_v27, 16 }
  0x51   : > { %955 = vrot.lane.b32.xlu1 %v2841_v40, %s2912_s20  ;;  %v587_v40 = vor.u32 %v586_v34, %v582_v33  ;;  %v607_v34 = vshrl.u32 %v3105_v60, 16 }
  0x52   : > { %751 = vrot.lane.b32.xlu0 %v564_v57, %s2913_s21 }
  0x53   : > { %v592_v47 = vsel %vm496_vm0, %v587_v40, %v591_v41  ;;  %v2474_v40 = vld [vmem:[%s2959_s19 + $0x74] sm:$0x1] }
  0x56   : > { %753 = vrot.lane.b32.xlu2 %v565_v62, %s2913_s21  ;;  %v2471_v62 = vld [vmem:[%s2959_s19 + $0x68] sm:$0x1] }
  0x57   : > { %v877_v1 = vunpack.c.l.b16 %v2471_v62 }
  0x59   : > { %957 = vrot.lane.b32.xlu1 %v914_v48, %s2912_s20  ;;  %v1092_v48 = vshrl.u32 %v2843_v38, 16  ;;  %v920_v15 = vpack.c.b16 %v877_v1, %v877_v1 }
  0x5a   : > { %1261 = vrot.lane.b32.xlu0 %v1074_v2, %s2914_s22 }
  0x5b   : > { %v1097_v57 = vor.u32 %v1096_v50, %v1092_v48  ;;  %v1113_v24 = vshll.u32 %v920_v15, 16  ;;  %v1117_v50 = vshrl.u32 %v920_v15, 16 }
  0x5d   : > { %v1102_v2 = vsel %vm496_vm0, %v1097_v57, %v1101_v59  ;;  %v1115_v33 = vrot.slane %v1113_v24, 1  ;;  %v286_v57 = vld [vmem:[%s2959_s19 + $0x74] sm:$0x1] }
  0x5e   : > { %1263 = vrot.lane.b32.xlu2 %v1075_v13, %s2914_s22  ;;  %v2854_v13 = vld [vmem:[%s4040_s1] sm:$0xff]  ;;  %v440_v1 = vunpack.c.l.b16 %v286_v57 }
  0x5f   : > { %1572 = vmatpush.bf16.msra.mxu0 %v2854_v13 }
  0x61   : > { %959 = vrot.lane.b32.xlu1 %v2842_v3, %s2912_s20  ;;  %v596_v3 = vshrl.u32 %v3095_v52, 16 }
  0x62   : > { %755 = vrot.lane.b32.xlu0 %v578_v22, %s2913_s21  ;;  %v1106_v22 = vshrl.u32 %v2844_v0, 16 }
  0x64   : > { %v1111_v31 = vor.u32 %v1110_v23, %v1106_v22  ;;  %v2477_v23 = vld [vmem:[%s2959_s19 + $0x80] sm:$0x1] }
  0x66   : > { %757 = vrot.lane.b32.xlu2 %v579_v28, %s2913_s21  ;;  %v437_v28 = vunpack.c.l.b16 %v283_v20  ;;  %v1116_v41 = vsel %vm496_vm0, %v1111_v31, %v1115_v33 }
  0x68   : > { %v3138_v35 = vpack.c.b16 %v437_v28, %v437_v28 }
  0x69   : > { %961 = vrot.lane.b32.xlu1 %v916_v17, %s2912_s20  ;;  %v601_v17 = vor.u32 %v600_v7, %v596_v3 }
  0x6a   : > { %1265 = vrot.lane.b32.xlu0 %v1088_v36, %s2914_s22  ;;  %v612_v36 = vshll.u32 %v3128_v27, 16  ;;  %v617_v46 = vshll.u32 %v3138_v35, 16 }
  0x6b   : > { %v606_v25 = vsel %vm496_vm0, %v601_v17, %v605_v18 }
  0x6c   : > { %v619_v55 = vrot.slane %v617_v46, 1 }
  0x6e   : > { %1267 = vrot.lane.b32.xlu2 %v1089_v42, %s2914_s22  ;;  %v2845_v42 = vld [vmem:[%s2959_s19 + $0x6c] sm:$0xff] }
  0x6f   : > { %v1122_v51 = vshll.u32 %v2845_v42, 16  ;;  %v1120_v3 = vshrl.u32 %v2845_v42, 16 }
  0x70   : > { %v3097_v54 = vpop.permute.xlu2 %945 }
  0x71   : > { %963 = vrot.lane.b32.xlu1 %v2843_v38, %s2912_s20  ;;  %v1124_v7 = vrot.slane %v1122_v51, 1 }
  0x72   : > { %759 = vrot.lane.b32.xlu0 %v592_v47, %s2913_s21  ;;  %v880_v47 = vunpack.c.l.b16 %v2474_v40 }
  0x76   : > { %761 = vrot.lane.b32.xlu2 %v593_v56, %s2913_s21  ;;  %v3153_v56 = vpack.c.b16 %v880_v47, %v880_v47 }
  0x78   : > { %v3114_v9 = vpop.permute.xlu2 %1251  ;;  %v1127_v8 = vshll.u32 %v3153_v56, 16 }
  0x79   : > { %965 = vrot.lane.b32.xlu1 %v918_v45, %s2912_s20  ;;  %v614_v45 = vrot.slane %v612_v36, 1  ;;  %v883_v36 = vunpack.c.l.b16 %v2477_v23 }
  0x7a   : > { %1269 = vrot.lane.b32.xlu0 %v1102_v2, %s2914_s22  ;;  %v1129_v18 = vrot.slane %v1127_v8, 1 }
  0x7b   : > { %v615_v53 = vor.u32 %v614_v45, %v610_v43 }
  0x7d   : > { %v620_v2 = vsel %vm496_vm0, %v615_v53, %v619_v55  ;;  %v3200_v53 = vpack.c.b16 %v883_v36, %v883_v36  ;;  %v289_v55 = vld [vmem:[%s2959_s19 + $0x80] sm:$0x1] }
  0x7e   : > { %1271 = vrot.lane.b32.xlu2 %v1103_v16, %s2914_s22  ;;  %v621_v16 = vshrl.u32 %v3138_v35, 16 }
  0x80   : > { %v3130_v29 = vpop.permute.xlu2 %737 }
  0x81   : > { %967 = vrot.lane.b32.xlu1 %v2844_v0, %s2912_s20  ;;  %v3159_v0 = vld [vmem:[%s2959_s19 + $0x6c] sm:$0xff] }
  0x82   : > { %763 = vrot.lane.b32.xlu0 %v606_v25, %s2913_s21  ;;  %v626_v14 = vshll.u32 %v3159_v0, 16  ;;  %v624_v25 = vshrl.u32 %v3159_v0, 16 }
  0x83   : > { %v944_v38 = vpop.permute.xlu0 %943  ;;  %v3141_v39 = vpop.permute.xlu1 %939 }
  0x84   : > { %v628_v28 = vrot.slane %v626_v14, 1 }
  0x86   : > { %765 = vrot.lane.b32.xlu2 %v607_v34, %s2913_s21  ;;  %v2846_v34 = vld [vmem:[%s2959_s19 + $0x78] sm:$0xff]  ;;  %v629_v43 = vor.u32 %v628_v28, %v624_v25 }
  0x87   : > { %v1136_v51 = vshll.u32 %v2846_v34, 16  ;;  %v1134_v8 = vshrl.u32 %v2846_v34, 16 }
  0x88   : > { %v3149_v48 = vpop.permute.xlu2 %1247 }
  0x89   : > { %969 = vrot.lane.b32.xlu1 %v920_v15, %s2912_s20  ;;  %v3173_v15 = vpack.c.b16 %v440_v1, %v440_v1 }
  0x8a   : > { %1273 = vrot.lane.b32.xlu0 %v1116_v41, %s2914_s22 }
  0x8b   : > { %v742_v59 = vpop.permute.xlu1 %741 }
  0x8c   : > { %v740_v61 = vpop.permute.xlu0 %739  ;;  %v1321_v62 = vsel %vm1313_vm1, %v2974_v10, %v742_v59 }
  0x8d   : > { %v1390_v11 = vsel %vm1382_vm2, %v1321_v62, %v3097_v54  ;;  %v1319_v10 = vsel %vm1313_vm1, %v2965_v4, %v740_v61  ;;  %v1125_v54 = vor.u32 %v1124_v7, %v1120_v3  ;;  %v3220_v3 = vld [vmem:[%s2959_s19 + $0x78] sm:$0xff]  ;;  %v443_v7 = vunpack.c.l.b16 %v289_v55 }
  0x8e   : > { %1275 = vrot.lane.b32.xlu2 %v1117_v50, %s2914_s22  ;;  %v1459_v17 = vsel %vm1451_vm3, %v1390_v11, %v3114_v9  ;;  %v1388_v4 = vsel %vm1382_vm2, %v1319_v10, %v944_v38  ;;  %v631_v9 = vshll.u32 %v3173_v15, 16  ;;  %v1131_v50 = vshrl.u32 %v3153_v56, 16 }
  0x8f   : > { %v1702_v30 = vshll.u32 %v1459_v17, 16  ;;  %v1130_v33 = vsel %vm496_vm0, %v1125_v54, %v1129_v18  ;;  %v1138_v11 = vrot.slane %v1136_v51, 1  ;;  %v1141_v10 = vshll.u32 %v3200_v53, 16  ;;  %v292_v51 = vld [vmem:[%s2959_s19 + $0x8c] sm:$0x1] }
  0x90   : > { %v3166_v13 = vpop.permute.xlu2 %745  ;;  %v633_v47 = vrot.slane %v631_v9, 1  ;;  %v3228_v18 = vpack.c.b16 %v443_v7, %v443_v7  ;;  %v638_v9 = vshrl.u32 %v3220_v3, 16  ;;  %v1145_v55 = vshrl.u32 %v3200_v53, 16 }
  0x91   : > { %971 = vrot.lane.b32.xlu1 %v2845_v42, %s2912_s20  ;;  %v1704_v45 = vrot.slane %v1702_v30, 1  ;;  %v1143_v23 = vrot.slane %v1141_v10, 1 }
  0x92   : > { %767 = vrot.lane.b32.xlu0 %v620_v2, %s2913_s21 }
  0x93   : > { %v1250_v20 = vpop.permute.xlu1 %1249 }
  0x94   : > { %v736_v22 = vpop.permute.xlu0 %735  ;;  %v3181_v24 = vsel %vm1451_vm3, %v1388_v4, %v1250_v20  ;;  %v640_v20 = vshll.u32 %v3220_v3, 16  ;;  %v635_v4 = vshrl.u32 %v3173_v15, 16 }
  0x95   : > { %v1698_v31 = vshll.u32 %v3181_v24, 16  ;;  %2715 = vmatmul.msk.bf16.vlgmr.msra.gmra.mxu2 %vm1532_vm4, %v3181_v24  ;;  %v1696_v38 = vshrl.u32 %v3181_v24, 16  ;;  %v1315_v42 = vsel %vm1313_vm1, %v2969_v6, %v736_v22  ;;  %v1317_v6 = vsel %vm1313_vm1, %v2981_v21, %v3130_v29 }
  0x96   : > { %769 = vrot.lane.b32.xlu2 %v621_v16, %s2913_s21  ;;  %v1384_v62 = vsel %vm1382_vm2, %v1315_v42, %v3141_v39  ;;  %v634_v29 = vsel %vm496_vm0, %v629_v43, %v633_v47  ;;  %v1139_v22 = vor.u32 %v1138_v11, %v1134_v8 }
  0x97   : > { %v1700_v40 = vrot.slane %v1698_v31, 1  ;;  %v2480_v31 = vld [vmem:[%s2959_s19 + $0x8c] sm:$0x1] }
  0x98   : > { %v3192_v41 = vpop.permute.xlu2 %1255  ;;  %v1144_v36 = vsel %vm496_vm0, %v1139_v22, %v1143_v23 }
  0x99   : > { %973 = vrot.lane.b32.xlu1 %v3153_v56, %s2912_s20  ;;  %v1701_v46 = vor.u32 %v1700_v40, %v1696_v38  ;;  %v2847_v38 = vld [vmem:[%s2959_s19 + $0x84] sm:$0xff]  ;;  %v886_v40 = vunpack.c.l.b16 %v2480_v31 }
  0x9a   : > { %1277 = vrot.lane.b32.xlu0 %v1130_v33, %s2914_s22  ;;  %v642_v33 = vrot.slane %v640_v20, 1  ;;  %v1150_v47 = vshll.u32 %v2847_v38, 16  ;;  %v649_v20 = vshrl.u32 %v3228_v18, 16 }
  0x9b   : > { %v942_v57 = vpop.permute.xlu1 %941  ;;  %v3207_v61 = vsel %vm496_vm0, %v1701_v46, %v1704_v45 }
  0x9c   : > { %v1246_v59 = vpop.permute.xlu0 %1245  ;;  %v1386_v1 = vsel %vm1382_vm2, %v1317_v6, %v942_v57  ;;  %2769 = vmatmul.msk.bf16.vlgmr.msra.gmra.mxu3 %vm1532_vm4, %v3207_v61  ;;  %v643_v45 = vor.u32 %v642_v33, %v638_v9  ;;  %v1325_v6 = vsel %vm1313_vm1, %v3000_v49, %v3166_v13  ;;  %v3264_v49 = vld [vmem:[%s2959_s19 + $0x84] sm:$0xff]  ;;  %v446_v13 = vunpack.c.l.b16 %v292_v51  ;;  %v2848_v33 = vld [vmem:[%s2959_s19 + $0x90] sm:$0xff] }
  0x9d   : > { %v1453_v56 = vsel %vm1451_vm3, %v1384_v62, %v1246_v59  ;;  %v1455_v2 = vsel %vm1451_vm3, %v1386_v1, %v3149_v48  ;;  %v1152_v7 = vrot.slane %v1150_v47, 1 }
  0x9e   : > { %2639 = vmatmul.msk.bf16.vlgmr.msra.gmra.mxu0 %vm1532_vm4, %v1453_v56  ;;  %v1688_v21 = vshll.u32 %v1453_v56, 16  ;;  %1279 = vrot.lane.b32.xlu2 %v1131_v50, %s2914_s22  ;;  %v1692_v39 = vshll.u32 %v1455_v2, 16  ;;  %v1686_v14 = vshrl.u32 %v1453_v56, 16  ;;  %v3247_v50 = vpack.c.b16 %v886_v40, %v886_v40 }
  0xa0   : > { %v1690_v16 = vrot.slane %v1688_v21, 1  ;;  %v3224_v17 = vpop.permute.xlu2 %749  ;;  %v1694_v48 = vrot.slane %v1692_v39, 1  ;;  %v1155_v39 = vshll.u32 %v3247_v50, 16  ;;  %v1159_v47 = vshrl.u32 %v3247_v50, 16 }
  0xa1   : > { %975 = vrot.lane.b32.xlu1 %v2846_v34, %s2912_s20  ;;  %v645_v34 = vshll.u32 %v3228_v18, 16  ;;  %v1329_v51 = vsel %vm1313_vm1, %v3020_v12, %v3224_v17 }
  0xa2   : > { %v1691_v54 = vor.u32 %v1690_v16, %v1686_v14  ;;  %771 = vrot.lane.b32.xlu0 %v634_v29, %s2913_s21  ;;  %v1148_v29 = vshrl.u32 %v2847_v38, 16  ;;  %v3272_v14 = vpack.c.b16 %v446_v13, %v446_v13  ;;  %v654_v16 = vshll.u32 %v3264_v49, 16 }
  0xa3   : > { %v948_v25 = vpop.permute.xlu1 %947  ;;  %v647_v46 = vrot.slane %v645_v34, 1 }
  0xa4   : > { %v744_v28 = vpop.permute.xlu0 %743  ;;  %v1695_v30 = vsel %vm496_vm0, %v1691_v54, %v1694_v48  ;;  %v1153_v48 = vor.u32 %v1152_v7, %v1148_v29  ;;  %v1157_v54 = vrot.slane %v1155_v39, 1  ;;  %v659_v31 = vshll.u32 %v3272_v14, 16 }
  0xa5   : > { %2661 = vmatmul.msk.bf16.vlgmr.msra.gmra.mxu1 %vm1532_vm4, %v1695_v30  ;;  %v1323_v43 = vsel %vm1313_vm1, %v2995_v44, %v744_v28  ;;  %v652_v28 = vshrl.u32 %v3264_v49, 16  ;;  %v656_v30 = vrot.slane %v654_v16, 1 }
  0xa6   : > { %773 = vrot.lane.b32.xlu2 %v635_v4, %s2913_s21  ;;  %v1392_v44 = vsel %vm1382_vm2, %v1323_v43, %v948_v25  ;;  %v2483_v25 = vld [vmem:[%s2959_s19 + $0x98] sm:$0x1]  ;;  %v1158_v9 = vsel %vm496_vm0, %v1153_v48, %v1157_v54  ;;  %v661_v40 = vrot.slane %v659_v31, 1  ;;  %v1164_v43 = vshll.u32 %v2848_v33, 16 }
  0xa7   : > { %v889_v34 = vunpack.c.l.b16 %v2483_v25 }
  0xa8   : > { %v3240_v42 = vpop.permute.xlu2 %1259 }
  0xa9   : > { %977 = vrot.lane.b32.xlu1 %v3200_v53, %s2912_s20  ;;  %v648_v53 = vsel %vm496_vm0, %v643_v45, %v647_v46  ;;  %v3293_v45 = vpack.c.b16 %v889_v34, %v889_v34  ;;  %v295_v46 = vld [vmem:[%s2959_s19 + $0x98] sm:$0x1] }
  0xaa   : > { %1281 = vrot.lane.b32.xlu0 %v1144_v36, %s2914_s22  ;;  %v449_v12 = vunpack.c.l.b16 %v295_v46 }
  0xab   : > { %v950_v57 = vpop.permute.xlu1 %949  ;;  %v1169_v13 = vshll.u32 %v3293_v45, 16 }
  0xac   : > { %v1254_v59 = vpop.permute.xlu0 %1253  ;;  %v1394_v62 = vsel %vm1382_vm2, %v1325_v6, %v950_v57  ;;  %v3317_v39 = vpack.c.b16 %v449_v12, %v449_v12 }
  0xad   : > { %v1461_v1 = vsel %vm1451_vm3, %v1392_v44, %v1254_v59  ;;  %v1463_v2 = vsel %vm1451_vm3, %v1394_v62, %v3192_v41 }
  0xae   : > { %v1708_v56 = vshll.u32 %v1461_v1, 16  ;;  %2640 = vmatmul.msk.bf16.gmra.mxu0 %vm1532_vm4, %v3181_v24  ;;  %2716 = vmatmul.msk.bf16.gmra.mxu2 %vm1532_vm4, %v1461_v1  ;;  %v1712_v21 = vshll.u32 %v1463_v2, 16  ;;  %v1706_v8 = vshrl.u32 %v1461_v1, 16  ;;  %v1162_v2 = vshrl.u32 %v2848_v33, 16 }
  0xaf   : > { %1283 = vrot.lane.b32.xlu2 %v1145_v55, %s2914_s22  ;;  %v673_v25 = vshll.u32 %v3317_v39, 16 }
  0xb0   : > { %v1710_v41 = vrot.slane %v1708_v56, 1  ;;  %v3268_v11 = vpop.permute.xlu2 %753  ;;  %v1714_v24 = vrot.slane %v1712_v21, 1  ;;  %v3309_v56 = vld [vmem:[%s2959_s19 + $0x90] sm:$0xff] }
  0xb1   : > { %979 = vrot.lane.b32.xlu1 %v2847_v38, %s2912_s20  ;;  %v675_v34 = vrot.slane %v673_v25, 1  ;;  %v1333_v46 = vsel %vm1313_vm1, %v3040_v37, %v3268_v11 }
  0xb2   : > { %775 = vrot.lane.b32.xlu0 %v648_v53, %s2913_s21  ;;  %v1711_v10 = vor.u32 %v1710_v41, %v1706_v8  ;;  %v1166_v53 = vrot.slane %v1164_v43, 1  ;;  %v668_v8 = vshll.u32 %v3309_v56, 16  ;;  %v1173_v43 = vshrl.u32 %v3293_v45, 16 }
  0xb3   : > { %v952_v4 = vpop.permute.xlu1 %951 }
  0xb4   : > { %v748_v22 = vpop.permute.xlu0 %747  ;;  %v1715_v23 = vsel %vm496_vm0, %v1711_v10, %v1714_v24  ;;  %v1167_v41 = vor.u32 %v1166_v53, %v1162_v2  ;;  %v1171_v24 = vrot.slane %v1169_v13, 1  ;;  %v663_v10 = vshrl.u32 %v3272_v14, 16 }
  0xb5   : > { %2662 = vmatmul.msk.bf16.gmra.mxu1 %vm1532_vm4, %v3207_v61  ;;  %2770 = vmatmul.msk.bf16.gmra.mxu3 %vm1532_vm4, %v1715_v23  ;;  %v1327_v38 = vsel %vm1313_vm1, %v3015_v5, %v748_v22  ;;  %v657_v61 = vor.u32 %v656_v30, %v652_v28  ;;  %v670_v22 = vrot.slane %v668_v8, 1  ;;  %v2849_v30 = vld [vmem:[%s2959_s19 + $0x9c] sm:$0xff] }
  0xb6   : > { %v1396_v5 = vsel %vm1382_vm2, %v1327_v38, %v952_v4  ;;  %v666_v4 = vshrl.u32 %v3309_v56, 16  ;;  %v1172_v28 = vsel %vm496_vm0, %v1167_v41, %v1171_v24  ;;  %v1178_v38 = vshll.u32 %v2849_v30, 16 }
  0xb7   : > { %777 = vrot.lane.b32.xlu2 %v649_v20, %s2913_s21  ;;  %v2486_v20 = vld [vmem:[%s2959_s19 + $0xa4] sm:$0x1] }
  0xb8   : > { %v3286_v36 = vpop.permute.xlu2 %1263  ;;  %v892_v31 = vunpack.c.l.b16 %v2486_v20 }
  0xb9   : > { %981 = vrot.lane.b32.xlu1 %v3247_v50, %s2912_s20  ;;  %v662_v50 = vsel %vm496_vm0, %v657_v61, %v661_v40  ;;  %v298_v40 = vld [vmem:[%s2959_s19 + $0xa4] sm:$0x1] }
  0xba   : > { %1285 = vrot.lane.b32.xlu0 %v1158_v9, %s2914_s22  ;;  %v3337_v61 = vpack.c.b16 %v892_v31, %v892_v31  ;;  %v452_v37 = vunpack.c.l.b16 %v298_v40 }
  0xbb   : > { %v954_v55 = vpop.permute.xlu1 %953 }
  0xbc   : > { %v1258_v6 = vpop.permute.xlu0 %1257  ;;  %v1398_v57 = vsel %vm1382_vm2, %v1329_v51, %v954_v55  ;;  %v1183_v12 = vshll.u32 %v3337_v61, 16  ;;  %v3361_v13 = vpack.c.b16 %v452_v37, %v452_v37 }
  0xbd   : > { %v1465_v44 = vsel %vm1451_vm3, %v1396_v5, %v1258_v6  ;;  %v1467_v62 = vsel %vm1451_vm3, %v1398_v57, %v3240_v42 }
  0xbe   : > { %v1718_v59 = vshll.u32 %v1465_v44, 16  ;;  %2641 = vmatmul.msk.bf16.gmra.mxu0 %vm1532_vm4, %v1461_v1  ;;  %2717 = vmatmul.msk.bf16.gmra.mxu2 %vm1532_vm4, %v1465_v44  ;;  %v1722_v17 = vshll.u32 %v1467_v62, 16  ;;  %v1716_v21 = vshrl.u32 %v1465_v44, 16  ;;  %v1176_v62 = vshrl.u32 %v2849_v30, 16 }
  0xbf   : > { %1287 = vrot.lane.b32.xlu2 %v1159_v47, %s2914_s22  ;;  %v687_v20 = vshll.u32 %v3361_v13, 16 }
  0xc0   : > { %v1720_v29 = vrot.slane %v1718_v59, 1  ;;  %v3313_v42 = vpop.permute.xlu2 %757  ;;  %v1724_v1 = vrot.slane %v1722_v17, 1  ;;  %v3353_v59 = vld [vmem:[%s2959_s19 + $0x9c] sm:$0xff] }
  0xc1   : > { %983 = vrot.lane.b32.xlu1 %v2848_v33, %s2912_s20  ;;  %v689_v31 = vrot.slane %v687_v20, 1  ;;  %v1337_v40 = vsel %vm1313_vm1, %v3060_v63, %v3313_v42 }
  0xc2   : > { %779 = vrot.lane.b32.xlu0 %v662_v50, %s2913_s21  ;;  %v1721_v7 = vor.u32 %v1720_v29, %v1716_v21  ;;  %v1180_v50 = vrot.slane %v1178_v38, 1  ;;  %v682_v21 = vshll.u32 %v3353_v59, 16  ;;  %v1187_v38 = vshrl.u32 %v3337_v61, 16 }
  0xc3   : > { %v956_v16 = vpop.permute.xlu1 %955 }
  0xc4   : > { %v752_v48 = vpop.permute.xlu0 %751  ;;  %v1725_v54 = vsel %vm496_vm0, %v1721_v7, %v1724_v1  ;;  %v1181_v29 = vor.u32 %v1180_v50, %v1176_v62  ;;  %v1185_v1 = vrot.slane %v1183_v12, 1  ;;  %v677_v7 = vshrl.u32 %v3317_v39, 16 }
  0xc5   : > { %2663 = vmatmul.msk.bf16.gmra.mxu1 %vm1532_vm4, %v1715_v23  ;;  %2771 = vmatmul.msk.bf16.gmra.mxu3 %vm1532_vm4, %v1725_v54  ;;  %v1331_v33 = vsel %vm1313_vm1, %v3035_v32, %v752_v48  ;;  %v671_v23 = vor.u32 %v670_v22, %v666_v4  ;;  %v684_v48 = vrot.slane %v682_v21, 1  ;;  %v2850_v22 = vld [vmem:[%s2959_s19 + $0xa8] sm:$0xff] }
  0xc6   : > { %v1400_v32 = vsel %vm1382_vm2, %v1331_v33, %v956_v16  ;;  %v680_v16 = vshrl.u32 %v3353_v59, 16  ;;  %v1186_v4 = vsel %vm496_vm0, %v1181_v29, %v1185_v1  ;;  %v1192_v33 = vshll.u32 %v2850_v22, 16 }
  0xc7   : > { %781 = vrot.lane.b32.xlu2 %v663_v10, %s2913_s21  ;;  %v2489_v10 = vld [vmem:[%s2959_s19 + $0xb0] sm:$0x1] }
  0xc8   : > { %v3330_v9 = vpop.permute.xlu2 %1267  ;;  %v895_v25 = vunpack.c.l.b16 %v2489_v10 }
  0xc9   : > { %985 = vrot.lane.b32.xlu1 %v3293_v45, %s2912_s20  ;;  %v676_v45 = vsel %vm496_vm0, %v671_v23, %v675_v34  ;;  %v301_v34 = vld [vmem:[%s2959_s19 + $0xb0] sm:$0x1] }
  0xca   : > { %1289 = vrot.lane.b32.xlu0 %v1172_v28, %s2914_s22  ;;  %v3381_v23 = vpack.c.b16 %v895_v25, %v895_v25  ;;  %v455_v63 = vunpack.c.l.b16 %v301_v34 }
  0xcb   : > { %v958_v47 = vpop.permute.xlu1 %957 }
  0xcc   : > { %v1262_v51 = vpop.permute.xlu0 %1261  ;;  %v1402_v55 = vsel %vm1382_vm2, %v1333_v46, %v958_v47  ;;  %v1197_v37 = vshll.u32 %v3381_v23, 16  ;;  %v3405_v12 = vpack.c.b16 %v455_v63, %v455_v63 }
  0xcd   : > { %v1469_v5 = vsel %vm1451_vm3, %v1400_v32, %v1262_v51  ;;  %v1471_v57 = vsel %vm1451_vm3, %v1402_v55, %v3286_v36 }
  0xce   : > { %v1728_v6 = vshll.u32 %v1469_v5, 16  ;;  %2642 = vmatmul.msk.bf16.gmra.mxu0 %vm1532_vm4, %v1465_v44  ;;  %2718 = vmatmul.msk.bf16.gmra.mxu2 %vm1532_vm4, %v1469_v5  ;;  %v1732_v11 = vshll.u32 %v1471_v57, 16  ;;  %v1726_v17 = vshrl.u32 %v1469_v5, 16  ;;  %v1190_v57 = vshrl.u32 %v2850_v22, 16 }
  0xcf   : > { %1291 = vrot.lane.b32.xlu2 %v1173_v43, %s2914_s22  ;;  %v701_v10 = vshll.u32 %v3405_v12, 16 }
  0xd0   : > { %v1730_v2 = vrot.slane %v1728_v6, 1  ;;  %v3357_v36 = vpop.permute.xlu2 %761  ;;  %v1734_v44 = vrot.slane %v1732_v11, 1  ;;  %v3397_v6 = vld [vmem:[%s2959_s19 + $0xa8] sm:$0xff] }
  0xd1   : > { %987 = vrot.lane.b32.xlu1 %v2849_v30, %s2912_s20  ;;  %v703_v25 = vrot.slane %v701_v10, 1  ;;  %v1341_v34 = vsel %vm1313_vm1, %v3079_v26, %v3357_v36 }
  0xd2   : > { %783 = vrot.lane.b32.xlu0 %v676_v45, %s2913_s21  ;;  %v1731_v53 = vor.u32 %v1730_v2, %v1726_v17  ;;  %v1194_v45 = vrot.slane %v1192_v33, 1  ;;  %v696_v17 = vshll.u32 %v3397_v6, 16  ;;  %v1201_v33 = vshrl.u32 %v3381_v23, 16 }
  0xd3   : > { %v960_v8 = vpop.permute.xlu1 %959 }
  0xd4   : > { %v756_v41 = vpop.permute.xlu0 %755  ;;  %v1735_v24 = vsel %vm496_vm0, %v1731_v53, %v1734_v44  ;;  %v1195_v2 = vor.u32 %v1194_v45, %v1190_v57  ;;  %v1199_v44 = vrot.slane %v1197_v37, 1  ;;  %v691_v53 = vshrl.u32 %v3361_v13, 16 }
  0xd5   : > { %2664 = vmatmul.msk.bf16.gmra.mxu1 %vm1532_vm4, %v1725_v54  ;;  %2772 = vmatmul.msk.bf16.gmra.mxu3 %vm1532_vm4, %v1735_v24  ;;  %v1335_v30 = vsel %vm1313_vm1, %v3055_v58, %v756_v41  ;;  %v685_v54 = vor.u32 %v684_v48, %v680_v16  ;;  %v698_v41 = vrot.slane %v696_v17, 1  ;;  %v2851_v48 = vld [vmem:[%s2959_s19 + $0xb4] sm:$0xff] }
  0xd6   : > { %v1404_v58 = vsel %vm1382_vm2, %v1335_v30, %v960_v8  ;;  %v694_v8 = vshrl.u32 %v3397_v6, 16  ;;  %v1200_v16 = vsel %vm496_vm0, %v1195_v2, %v1199_v44  ;;  %v1206_v30 = vshll.u32 %v2851_v48, 16 }
  0xd7   : > { %785 = vrot.lane.b32.xlu2 %v677_v7, %s2913_s21  ;;  %v2492_v7 = vld [vmem:[%s2959_s19 + $0xbc] sm:$0x1] }
  0xd8   : > { %v3374_v28 = vpop.permute.xlu2 %1271  ;;  %v898_v20 = vunpack.c.l.b16 %v2492_v7 }
  0xd9   : > { %989 = vrot.lane.b32.xlu1 %v3337_v61, %s2912_s20  ;;  %v690_v61 = vsel %vm496_vm0, %v685_v54, %v689_v31  ;;  %v304_v31 = vld [vmem:[%s2959_s19 + $0xbc] sm:$0x1] }
  0xda   : > { %1293 = vrot.lane.b32.xlu0 %v1186_v4, %s2914_s22  ;;  %v3425_v54 = vpack.c.b16 %v898_v20, %v898_v20  ;;  %v458_v26 = vunpack.c.l.b16 %v304_v31 }
  0xdb   : > { %v962_v43 = vpop.permute.xlu1 %961 }
  0xdc   : > { %v1266_v46 = vpop.permute.xlu0 %1265  ;;  %v1406_v47 = vsel %vm1382_vm2, %v1337_v40, %v962_v43  ;;  %v1211_v63 = vshll.u32 %v3425_v54, 16  ;;  %v3449_v37 = vpack.c.b16 %v458_v26, %v458_v26 }
  0xdd   : > { %v1473_v32 = vsel %vm1451_vm3, %v1404_v58, %v1266_v46  ;;  %v1475_v55 = vsel %vm1451_vm3, %v1406_v47, %v3330_v9 }
  0xde   : > { %v1738_v51 = vshll.u32 %v1473_v32, 16  ;;  %2643 = vmatmul.msk.bf16.gmra.mxu0 %vm1532_vm4, %v1469_v5  ;;  %2719 = vmatmul.msk.bf16.gmra.mxu2 %vm1532_vm4, %v1473_v32  ;;  %v1742_v42 = vshll.u32 %v1475_v55, 16  ;;  %v1736_v11 = vshrl.u32 %v1473_v32, 16  ;;  %v1204_v55 = vshrl.u32 %v2851_v48, 16 }
  0xdf   : > { %1295 = vrot.lane.b32.xlu2 %v1187_v38, %s2914_s22  ;;  %v715_v7 = vshll.u32 %v3449_v37, 16 }
  0xe0   : > { %v1740_v62 = vrot.slane %v1738_v51, 1  ;;  %v3401_v9 = vpop.permute.xlu2 %765  ;;  %v1744_v5 = vrot.slane %v1742_v42, 1  ;;  %v3441_v51 = vld [vmem:[%s2959_s19 + $0xb4] sm:$0xff] }
  0xe1   : > { %991 = vrot.lane.b32.xlu1 %v2850_v22, %s2912_s20  ;;  %v717_v20 = vrot.slane %v715_v7, 1  ;;  %v1345_v31 = vsel %vm1313_vm1, %v3105_v60, %v3401_v9 }
  0xe2   : > { %787 = vrot.lane.b32.xlu0 %v690_v61, %s2913_s21  ;;  %v1741_v50 = vor.u32 %v1740_v62, %v1736_v11  ;;  %v1208_v61 = vrot.slane %v1206_v30, 1  ;;  %v710_v11 = vshll.u32 %v3441_v51, 16  ;;  %v1215_v30 = vshrl.u32 %v3425_v54, 16 }
  0xe3   : > { %v964_v21 = vpop.permute.xlu1 %963 }
  0xe4   : > { %v760_v29 = vpop.permute.xlu0 %759  ;;  %v1745_v1 = vsel %vm496_vm0, %v1741_v50, %v1744_v5  ;;  %v1209_v62 = vor.u32 %v1208_v61, %v1204_v55  ;;  %v1213_v5 = vrot.slane %v1211_v63, 1  ;;  %v705_v50 = vshrl.u32 %v3405_v12, 16 }
  0xe5   : > { %2665 = vmatmul.msk.bf16.gmra.mxu1 %vm1532_vm4, %v1735_v24  ;;  %2773 = vmatmul.msk.bf16.gmra.mxu3 %vm1532_vm4, %v1745_v1  ;;  %v1339_v22 = vsel %vm1313_vm1, %v3073_v19, %v760_v29  ;;  %v699_v24 = vor.u32 %v698_v41, %v694_v8  ;;  %v712_v29 = vrot.slane %v710_v11, 1  ;;  %v2852_v41 = vld [vmem:[%s2959_s19 + $0xc0] sm:$0xff] }
  0xe6   : > { %v1408_v19 = vsel %vm1382_vm2, %v1339_v22, %v964_v21  ;;  %v708_v21 = vshrl.u32 %v3441_v51, 16  ;;  %v1214_v8 = vsel %vm496_vm0, %v1209_v62, %v1213_v5  ;;  %v1220_v22 = vshll.u32 %v2852_v41, 16 }
  0xe7   : > { %789 = vrot.lane.b32.xlu2 %v691_v53, %s2913_s21  ;;  %v2495_v53 = vld [vmem:[%s2959_s19 + $0xc8] sm:$0x1] }
  0xe8   : > { %v3418_v4 = vpop.permute.xlu2 %1275  ;;  %v901_v10 = vunpack.c.l.b16 %v2495_v53 }
  0xe9   : > { %993 = vrot.lane.b32.xlu1 %v3381_v23, %s2912_s20  ;;  %v704_v23 = vsel %vm496_vm0, %v699_v24, %v703_v25  ;;  %v307_v25 = vld [vmem:[%s2959_s19 + $0xc8] sm:$0x1] }
  0xea   : > { %1297 = vrot.lane.b32.xlu0 %v1200_v16, %s2914_s22  ;;  %v3469_v24 = vpack.c.b16 %v901_v10, %v901_v10  ;;  %v461_v60 = vunpack.c.l.b16 %v307_v25 }
  0xeb   : > { %v966_v38 = vpop.permute.xlu1 %965 }
  0xec   : > { %v1270_v40 = vpop.permute.xlu0 %1269  ;;  %v1410_v43 = vsel %vm1382_vm2, %v1341_v34, %v966_v38  ;;  %v1225_v26 = vshll.u32 %v3469_v24, 16  ;;  %v3493_v63 = vpack.c.b16 %v461_v60, %v461_v60 }
  0xed   : > { %v1477_v58 = vsel %vm1451_vm3, %v1408_v19, %v1270_v40  ;;  %v1479_v47 = vsel %vm1451_vm3, %v1410_v43, %v3374_v28 }
  0xee   : > { %v1748_v46 = vshll.u32 %v1477_v58, 16  ;;  %2644 = vmatmul.msk.bf16.gmra.mxu0 %vm1532_vm4, %v1473_v32  ;;  %2720 = vmatmul.msk.bf16.gmra.mxu2 %vm1532_vm4, %v1477_v58  ;;  %v1752_v36 = vshll.u32 %v1479_v47, 16  ;;  %v1746_v42 = vshrl.u32 %v1477_v58, 16  ;;  %v1218_v47 = vshrl.u32 %v2852_v41, 16 }
  0xef   : > { %1299 = vrot.lane.b32.xlu2 %v1201_v33, %s2914_s22  ;;  %v729_v53 = vshll.u32 %v3493_v63, 16 }
  0xf0   : > { %v1750_v57 = vrot.slane %v1748_v46, 1  ;;  %v3445_v28 = vpop.permute.xlu2 %769  ;;  %v1754_v32 = vrot.slane %v1752_v36, 1  ;;  %v3485_v46 = vld [vmem:[%s2959_s19 + $0xc0] sm:$0xff] }
  0xf1   : > { %995 = vrot.lane.b32.xlu1 %v2851_v48, %s2912_s20  ;;  %v731_v10 = vrot.slane %v729_v53, 1 }
  0xf2   : > { %791 = vrot.lane.b32.xlu0 %v704_v23, %s2913_s21  ;;  %v1751_v45 = vor.u32 %v1750_v57, %v1746_v42  ;;  %v1222_v23 = vrot.slane %v1220_v22, 1  ;;  %v724_v42 = vshll.u32 %v3485_v46, 16  ;;  %v1349_v22 = vsel %vm1313_vm1, %v3138_v35, %v3445_v28 }
  0xf3   : > { %v968_v17 = vpop.permute.xlu1 %967 }
  0xf4   : > { %v764_v2 = vpop.permute.xlu0 %763  ;;  %v1755_v44 = vsel %vm496_vm0, %v1751_v45, %v1754_v32  ;;  %v1223_v57 = vor.u32 %v1222_v23, %v1218_v47  ;;  %v1227_v32 = vrot.slane %v1225_v26, 1  ;;  %v719_v45 = vshrl.u32 %v3449_v37, 16 }
  0xf5   : > { %2666 = vmatmul.msk.bf16.gmra.mxu1 %vm1532_vm4, %v1745_v1  ;;  %2774 = vmatmul.msk.bf16.gmra.mxu3 %vm1532_vm4, %v1755_v44  ;;  %v1343_v48 = vsel %vm1313_vm1, %v3095_v52, %v764_v2  ;;  %v713_v1 = vor.u32 %v712_v29, %v708_v21  ;;  %v726_v2 = vrot.slane %v724_v42, 1  ;;  %v2853_v29 = vld [vmem:[%s2959_s19 + $0xcc] sm:$0xff]  ;;  %v733_v23 = vshrl.u32 %v3493_v63, 16 }
  0xf6   : > { %v1412_v52 = vsel %vm1382_vm2, %v1343_v48, %v968_v17  ;;  %v722_v17 = vshrl.u32 %v3485_v46, 16  ;;  %v1228_v21 = vsel %vm496_vm0, %v1223_v57, %v1227_v32  ;;  %v1234_v48 = vshll.u32 %v2853_v29, 16 }
  0xf7   : > { %793 = vrot.lane.b32.xlu2 %v705_v50, %s2913_s21  ;;  %v2498_v50 = vld [vmem:[%s2959_s19 + $0xd4] sm:$0x1]  ;;  %v1232_v35 = vshrl.u32 %v2853_v29, 16 }
  0xf8   : > { %v3462_v16 = vpop.permute.xlu2 %1279  ;;  %v904_v7 = vunpack.c.l.b16 %v2498_v50  ;;  %v1236_v28 = vrot.slane %v1234_v48, 1 }
  0xf9   : > { %997 = vrot.lane.b32.xlu1 %v3425_v54, %s2912_s20  ;;  %v718_v54 = vsel %vm496_vm0, %v713_v1, %v717_v20  ;;  %v1229_v20 = vshrl.u32 %v3469_v24, 16 }
  0xfa   : > { %1301 = vrot.lane.b32.xlu0 %v1214_v8, %s2914_s22  ;;  %v938_v1 = vpack.c.b16 %v904_v7, %v904_v7 }
  0xfb   : > { %v970_v33 = vpop.permute.xlu1 %969 }
  0xfc   : > { %v1274_v34 = vpop.permute.xlu0 %1273  ;;  %v1414_v38 = vsel %vm1382_vm2, %v1345_v31, %v970_v33 }
  0xfd   : > { %v1481_v19 = vsel %vm1451_vm3, %v1412_v52, %v1274_v34  ;;  %v1483_v43 = vsel %vm1451_vm3, %v1414_v38, %v3418_v4 }
  0xfe   : > { %v1758_v40 = vshll.u32 %v1481_v19, 16  ;;  %2645 = vmatmul.msk.bf16.gmra.mxu0 %vm1532_vm4, %v1477_v58  ;;  %2721 = vmatmul.msk.bf16.gmra.mxu2 %vm1532_vm4, %v1481_v19  ;;  %v1762_v9 = vshll.u32 %v1483_v43, 16  ;;  %v1756_v36 = vshrl.u32 %v1481_v19, 16 }
  0xff   : > { %1303 = vrot.lane.b32.xlu2 %v1215_v30, %s2914_s22 }
 0x100   : > { %v1760_v55 = vrot.slane %v1758_v40, 1  ;;  %v3489_v4 = vpop.permute.xlu2 %773  ;;  %v1764_v58 = vrot.slane %v1762_v9, 1  ;;  %v1239_v40 = vshll.u32 %v938_v1, 16 }
 0x101   : > { %999 = vrot.lane.b32.xlu1 %v2852_v41, %s2912_s20 }
 0x102   : > { %795 = vrot.lane.b32.xlu0 %v718_v54, %s2913_s21  ;;  %v1761_v61 = vor.u32 %v1760_v55, %v1756_v36  ;;  %v1241_v47 = vrot.slane %v1239_v40, 1 }
 0x103   : > { %v972_v11 = vpop.permute.xlu1 %971 }
 0x104   : > { %v768_v62 = vpop.permute.xlu0 %767  ;;  %v1765_v5 = vsel %vm496_vm0, %v1761_v61, %v1764_v58  ;;  %v3538_v58 = vld [vmem:[%s4041_s2] ss:$0 sm:$0xff] }
 0x105   : > { %2667 = vmatmul.msk.bf16.gmra.mxu1 %vm1532_vm4, %v1755_v44  ;;  %2775 = vmatmul.msk.bf16.gmra.mxu3 %vm1532_vm4, %v1765_v5  ;;  %v1347_v8 = vsel %vm1313_vm1, %v3128_v27, %v768_v62  ;;  %v727_v44 = vor.u32 %v726_v2, %v722_v17  ;;  %v1243_v62 = vshrl.u32 %v938_v1, 16 }
 0x106   : > { %v1416_v27 = vsel %vm1382_vm2, %v1347_v8, %v972_v11 }
 0x107   : > { %797 = vrot.lane.b32.xlu2 %v719_v45, %s2913_s21 }
 0x109   : > { %v3508_v41 = vpop.permute.xlu2 %1283  ;;  %1001 = vrot.lane.b32.xlu1 %v3469_v24, %s2912_s20  ;;  %v732_v24 = vsel %vm496_vm0, %v727_v44, %v731_v10 }
 0x10a   : > { %1305 = vrot.lane.b32.xlu0 %v1228_v21, %s2914_s22 }
 0x10b   : > { %v974_v25 = vpop.permute.xlu1 %973 }
 0x10c   : > { %v1278_v30 = vpop.permute.xlu0 %1277  ;;  %v1418_v31 = vsel %vm1382_vm2, %v1349_v22, %v974_v25 }
 0x10d   : > { %v1485_v33 = vsel %vm1451_vm3, %v1416_v27, %v1278_v30  ;;  %v1487_v34 = vsel %vm1451_vm3, %v1418_v31, %v3462_v16 }
 0x10e   : > { %v1768_v52 = vshll.u32 %v1485_v33, 16  ;;  %2646 = vmatmul.msk.bf16.gmra.mxu0 %vm1532_vm4, %v1481_v19  ;;  %2722 = vmatmul.msk.bf16.gmra.mxu2 %vm1532_vm4, %v1485_v33  ;;  %v1772_v38 = vshll.u32 %v1487_v34, 16  ;;  %v1766_v43 = vshrl.u32 %v1485_v33, 16  ;;  %v1237_v19 = vor.u32 %v1236_v28, %v1232_v35 }
 0x10f   : > { %1307 = vrot.lane.b32.xlu2 %v1229_v20, %s2914_s22 }
 0x110   : > { %v1770_v54 = vrot.slane %v1768_v52, 1  ;;  %v1774_v60 = vrot.slane %v1772_v38, 1  ;;  %v1242_v61 = vsel %vm496_vm0, %v1237_v19, %v1241_v47 }
 0x111   : > { %v3526_v9 = vpop.permute.xlu2 %777  ;;  %1003 = vrot.lane.b32.xlu1 %v2853_v29, %s2912_s20 }
 0x112   : > { %799 = vrot.lane.b32.xlu0 %v732_v24, %s2913_s21  ;;  %v1771_v16 = vor.u32 %v1770_v54, %v1766_v43 }
 0x113   : > { %v976_v26 = vpop.permute.xlu1 %975 }
 0x114   : > { %v772_v36 = vpop.permute.xlu0 %771  ;;  %v1775_v55 = vsel %vm496_vm0, %v1771_v16, %v1774_v60  ;;  %v1357_v60 = vsel %vm1313_vm1, %v3228_v18, %v3526_v9 }
 0x115   : > { %2668 = vmatmul.msk.bf16.gmra.mxu1 %vm1532_vm4, %v1765_v5  ;;  %2776 = vmatmul.msk.bf16.gmra.mxu3 %vm1532_vm4, %v1775_v55  ;;  %v1351_v42 = vsel %vm1313_vm1, %v3159_v0, %v772_v36  ;;  %v1353_v5 = vsel %vm1313_vm1, %v3173_v15, %v3489_v4 }
 0x116   : > { %v1420_v17 = vsel %vm1382_vm2, %v1351_v42, %v976_v26 }
 0x117   : > { %801 = vrot.lane.b32.xlu2 %v733_v23, %s2913_s21 }
 0x118   : > { %v2045_v57 = vpop.f32.mrf.mxu2 }
 0x119   : > { %v1288_v32 = vpop.permute.xlu2 %1287  ;;  %v2046_v45 = vadd.f32 %v3538_v58, %v2045_v57  ;;  %1005 = vrot.lane.b32.xlu1 %v938_v1, %s2912_s20 }
 0x11a   : > { %1309 = vrot.lane.b32.xlu0 %v1242_v61, %s2914_s22 }
 0x11b   : > { %v1574_v11 = vpop.f32.mrf.mxu0  ;;  %2731 = vst.msk [vmem:[%s3545_s9 + $0x200] sm:$0xff] %vm1313_vm1, %v2046_v45  ;;  %v978_v0 = vpop.permute.xlu1 %977 }
 0x11c   : > { %v1575_v50 = vadd.f32 %v3538_v58, %v1574_v11  ;;  %v1282_v2 = vpop.permute.xlu0 %1281  ;;  %v1422_v53 = vsel %vm1382_vm2, %v1353_v5, %v978_v0 }
 0x11d   : > { %v1489_v21 = vsel %vm1451_vm3, %v1420_v17, %v1282_v2  ;;  %v1491_v7 = vsel %vm1451_vm3, %v1422_v53, %v3508_v41 }
 0x11e   : > { %1654 = vst.msk [vmem:[%s3545_s9] sm:$0xff] %vm1313_vm1, %v1575_v50  ;;  %v1778_v29 = vshll.u32 %v1489_v21, 16  ;;  %2647 = vmatmul.msk.bf16.gmra.mxu0 %vm1532_vm4, %v1485_v33  ;;  %2723 = vmatmul.msk.bf16.gmra.mxu2 %vm1532_vm4, %v1489_v21  ;;  %v1782_v15 = vshll.u32 %v1491_v7, 16  ;;  %v1776_v4 = vshrl.u32 %v1489_v21, 16 }
 0x11f   : > { %1311 = vrot.lane.b32.xlu2 %v1243_v62, %s2914_s22  ;;  %v2189_v44 = vpop.f32.mrf.mxu3 }
 0x120   : > { %v1780_v8 = vrot.slane %v1778_v29, 1  ;;  %v1784_v10 = vrot.slane %v1782_v15, 1  ;;  %v2190_v48 = vadd.f32 %v3538_v58, %v2189_v44  ;;  %v2047_v1 = vpop.f32.mrf.mxu2 }
 0x121   : > { %v3569_v20 = vpop.permute.xlu2 %781  ;;  %v2048_v41 = vadd.f32 %v3538_v58, %v2047_v1 }
 0x122   : > { %v1912_v22 = vpop.f32.mrf.mxu1  ;;  %v1781_v25 = vor.u32 %v1780_v8, %v1776_v4  ;;  %2785 = vst.msk [vmem:[%s3545_s9 + $0x300] sm:$0xff] %vm1313_vm1, %v2190_v48  ;;  %v1361_v1 = vsel %vm1313_vm1, %v3272_v14, %v3569_v20 }
 0x123   : > { %v1913_v27 = vadd.f32 %v3538_v58, %v1912_v22  ;;  %v1576_v30 = vpop.f32.mrf.mxu0  ;;  %2732 = vst.msk [vmem:[%s3545_s9 + $0x208] sm:$0xff] %vm1313_vm1, %v2048_v41  ;;  %v980_v33 = vpop.permute.xlu1 %979 }
 0x124   : > { %v1577_v31 = vadd.f32 %v3538_v58, %v1576_v30  ;;  %v776_v52 = vpop.permute.xlu0 %775  ;;  %v1785_v34 = vsel %vm496_vm0, %v1781_v25, %v1784_v10 }
 0x125   : > { %2677 = vst.msk [vmem:[%s3545_s9 + $0x100] sm:$0xff] %vm1313_vm1, %v1913_v27  ;;  %2669 = vmatmul.msk.bf16.gmra.mxu1 %vm1532_vm4, %v1775_v55  ;;  %2777 = vmatmul.msk.bf16.gmra.mxu3 %vm1532_vm4, %v1785_v34  ;;  %v1355_v38 = vsel %vm1313_vm1, %v3220_v3, %v776_v52 }
 0x126   : > { %1655 = vst.msk [vmem:[%s3545_s9 + $0x8] sm:$0xff] %vm1313_vm1, %v1577_v31  ;;  %v1424_v47 = vsel %vm1382_vm2, %v1355_v38, %v980_v33 }
 0x127   : > { %v2191_v24 = vpop.f32.mrf.mxu3 }
 0x128   : > { %v2192_v35 = vadd.f32 %v3538_v58, %v2191_v24 }
 0x129   : > { %v1292_v28 = vpop.permute.xlu2 %1291 }
 0x12a   : > { %v1914_v40 = vpop.f32.mrf.mxu1  ;;  %2786 = vst.msk [vmem:[%s3545_s9 + $0x308] sm:$0xff] %vm1313_vm1, %v2192_v35 }
 0x12b   : > { %v1915_v43 = vadd.f32 %v3538_v58, %v1914_v40  ;;  %v1579_v54 = vpop.f32.mrf.mxu0  ;;  %v982_v19 = vpop.permute.xlu1 %981 }
 0x12c   : > { %v1580_v16 = vadd.f32 %v3538_v58, %v1579_v54  ;;  %v1286_v23 = vpop.permute.xlu0 %1285  ;;  %v1426_v3 = vsel %vm1382_vm2, %v1357_v60, %v982_v19 }
 0x12d   : > { %2678 = vst.msk [vmem:[%s3545_s9 + $0x108] sm:$0xff] %vm1313_vm1, %v1915_v43  ;;  %v1493_v26 = vsel %vm1451_vm3, %v1424_v47, %v1286_v23  ;;  %v1495_v55 = vsel %vm1451_vm3, %v1426_v3, %v1288_v32 }
 0x12e   : > { %1656 = vst.msk [vmem:[%s3545_s9 + $0x10] sm:$0xff] %vm1313_vm1, %v1580_v16  ;;  %v1788_v36 = vshll.u32 %v1493_v26, 16  ;;  %2648 = vmatmul.msk.bf16.gmra.mxu0 %vm1532_vm4, %v1489_v21  ;;  %2724 = vmatmul.msk.bf16.gmra.mxu2 %vm1532_vm4, %v1493_v26  ;;  %v1792_v18 = vshll.u32 %v1495_v55, 16  ;;  %v1786_v9 = vshrl.u32 %v1493_v26, 16 }
 0x130   : > { %v1790_v61 = vrot.slane %v1788_v36, 1  ;;  %v1794_v42 = vrot.slane %v1792_v18, 1 }
 0x131   : > { %v2050_v57 = vpop.f32.mrf.mxu2  ;;  %v3605_v45 = vpop.permute.xlu2 %785 }
 0x132   : > { %v2051_v11 = vadd.f32 %v3538_v58, %v2050_v57  ;;  %v1917_v62 = vpop.f32.mrf.mxu1  ;;  %v1791_v5 = vor.u32 %v1790_v61, %v1786_v9 }
 0x133   : > { %v1918_v50 = vadd.f32 %v3538_v58, %v1917_v62  ;;  %v1581_v32 = vpop.f32.mrf.mxu0  ;;  %v984_v17 = vpop.permute.xlu1 %983 }
 0x134   : > { %2733 = vst.msk [vmem:[%s3545_s9 + $0x210] sm:$0xff] %vm1313_vm1, %v2051_v11  ;;  %v1582_v0 = vadd.f32 %v3538_v58, %v1581_v32  ;;  %v780_v2 = vpop.permute.xlu0 %779  ;;  %v1795_v53 = vsel %vm496_vm0, %v1791_v5, %v1794_v42  ;;  %v1365_v11 = vsel %vm1313_vm1, %v3317_v39, %v3605_v45 }
 0x135   : > { %2679 = vst.msk [vmem:[%s3545_s9 + $0x110] sm:$0xff] %vm1313_vm1, %v1918_v50  ;;  %2670 = vmatmul.msk.bf16.gmra.mxu1 %vm1532_vm4, %v1785_v34  ;;  %2778 = vmatmul.msk.bf16.gmra.mxu3 %vm1532_vm4, %v1795_v53  ;;  %v1359_v29 = vsel %vm1313_vm1, %v3264_v49, %v780_v2 }
 0x136   : > { %1657 = vst.msk [vmem:[%s3545_s9 + $0x18] sm:$0xff] %vm1313_vm1, %v1582_v0  ;;  %v1428_v22 = vsel %vm1382_vm2, %v1359_v29, %v984_v17 }
 0x138   : > { %v2194_v21 = vpop.f32.mrf.mxu3 }
 0x139   : > { %v2195_v7 = vadd.f32 %v3538_v58, %v2194_v21  ;;  %v2052_v15 = vpop.f32.mrf.mxu2  ;;  %v1296_v48 = vpop.permute.xlu2 %1295 }
 0x13a   : > { %v2053_v4 = vadd.f32 %v3538_v58, %v2052_v15  ;;  %v1919_v8 = vpop.f32.mrf.mxu1 }
 0x13b   : > { %2787 = vst.msk [vmem:[%s3545_s9 + $0x310] sm:$0xff] %vm1313_vm1, %v2195_v7  ;;  %v1920_v44 = vadd.f32 %v3538_v58, %v1919_v8  ;;  %v1584_v10 = vpop.f32.mrf.mxu0  ;;  %v986_v41 = vpop.permute.xlu1 %985 }
 0x13c   : > { %2734 = vst.msk [vmem:[%s3545_s9 + $0x218] sm:$0xff] %vm1313_vm1, %v2053_v4  ;;  %v1585_v49 = vadd.f32 %v3538_v58, %v1584_v10  ;;  %v1290_v25 = vpop.permute.xlu0 %1289  ;;  %v1430_v27 = vsel %vm1382_vm2, %v1361_v1, %v986_v41 }
 0x13d   : > { %2680 = vst.msk [vmem:[%s3545_s9 + $0x118] sm:$0xff] %vm1313_vm1, %v1920_v44  ;;  %v1497_v30 = vsel %vm1451_vm3, %v1428_v22, %v1290_v25  ;;  %v1499_v14 = vsel %vm1451_vm3, %v1430_v27, %v1292_v28 }
 0x13e   : > { %1658 = vst.msk [vmem:[%s3545_s9 + $0x20] sm:$0xff] %vm1313_vm1, %v1585_v49  ;;  %v1798_v31 = vshll.u32 %v1497_v30, 16  ;;  %2649 = vmatmul.msk.bf16.gmra.mxu0 %vm1532_vm4, %v1493_v26  ;;  %2725 = vmatmul.msk.bf16.gmra.mxu2 %vm1532_vm4, %v1497_v30  ;;  %v1802_v20 = vshll.u32 %v1499_v14, 16  ;;  %v1796_v33 = vshrl.u32 %v1497_v30, 16 }
 0x140   : > { %v1800_v52 = vrot.slane %v1798_v31, 1  ;;  %v2196_v34 = vpop.f32.mrf.mxu3  ;;  %v1804_v24 = vrot.slane %v1802_v20, 1 }
 0x141   : > { %v2197_v38 = vadd.f32 %v3538_v58, %v2196_v34  ;;  %v2055_v35 = vpop.f32.mrf.mxu2  ;;  %v790_v3 = vpop.permute.xlu2 %789 }
 0x142   : > { %v2056_v40 = vadd.f32 %v3538_v58, %v2055_v35  ;;  %v1922_v43 = vpop.f32.mrf.mxu1  ;;  %v1801_v54 = vor.u32 %v1800_v52, %v1796_v33 }
 0x143   : > { %2788 = vst.msk [vmem:[%s3545_s9 + $0x318] sm:$0xff] %vm1313_vm1, %v2197_v38  ;;  %v1923_v28 = vadd.f32 %v3538_v58, %v1922_v43  ;;  %v1586_v60 = vpop.f32.mrf.mxu0  ;;  %v988_v19 = vpop.permute.xlu1 %987  ;;  %v1369_v38 = vsel %vm1313_vm1, %v3361_v13, %v790_v3 }
 0x144   : > { %2735 = vst.msk [vmem:[%s3545_s9 + $0x220] sm:$0xff] %vm1313_vm1, %v2056_v40  ;;  %v1587_v16 = vadd.f32 %v3538_v58, %v1586_v60  ;;  %v784_v47 = vpop.permute.xlu0 %783  ;;  %v1805_v23 = vsel %vm496_vm0, %v1801_v54, %v1804_v24 }
 0x145   : > { %2681 = vst.msk [vmem:[%s3545_s9 + $0x120] sm:$0xff] %vm1313_vm1, %v1923_v28  ;;  %2671 = vmatmul.msk.bf16.gmra.mxu1 %vm1532_vm4, %v1795_v53  ;;  %2779 = vmatmul.msk.bf16.gmra.mxu3 %vm1532_vm4, %v1805_v23  ;;  %v1363_v36 = vsel %vm1313_vm1, %v3309_v56, %v784_v47 }
 0x146   : > { %1659 = vst.msk [vmem:[%s3545_s9 + $0x28] sm:$0xff] %vm1313_vm1, %v1587_v16  ;;  %v1432_v5 = vsel %vm1382_vm2, %v1363_v36, %v988_v19 }
 0x148   : > { %v2199_v26 = vpop.f32.mrf.mxu3 }
 0x149   : > { %v2200_v55 = vadd.f32 %v3538_v58, %v2199_v26  ;;  %v2057_v18 = vpop.f32.mrf.mxu2  ;;  %v1300_v2 = vpop.permute.xlu2 %1299 }
 0x14a   : > { %v2058_v9 = vadd.f32 %v3538_v58, %v2057_v18  ;;  %v1924_v61 = vpop.f32.mrf.mxu1 }
 0x14b   : > { %2789 = vst.msk [vmem:[%s3545_s9 + $0x320] sm:$0xff] %vm1313_vm1, %v2200_v55  ;;  %v1925_v42 = vadd.f32 %v3538_v58, %v1924_v61  ;;  %v1589_v57 = vpop.f32.mrf.mxu0  ;;  %v990_v62 = vpop.permute.xlu1 %989 }
 0x14c   : > { %2736 = vst.msk [vmem:[%s3545_s9 + $0x228] sm:$0xff] %vm1313_vm1, %v2058_v9  ;;  %v1590_v56 = vadd.f32 %v3538_v58, %v1589_v57  ;;  %v1294_v50 = vpop.permute.xlu0 %1293  ;;  %v1434_v32 = vsel %vm1382_vm2, %v1365_v11, %v990_v62 }
 0x14d   : > { %2682 = vst.msk [vmem:[%s3545_s9 + $0x128] sm:$0xff] %vm1313_vm1, %v1925_v42  ;;  %v1501_v0 = vsel %vm1451_vm3, %v1432_v5, %v1294_v50  ;;  %v1503_v39 = vsel %vm1451_vm3, %v1434_v32, %v1296_v48 }
 0x14e   : > { %1660 = vst.msk [vmem:[%s3545_s9 + $0x30] sm:$0xff] %vm1313_vm1, %v1590_v56  ;;  %v1808_v17 = vshll.u32 %v1501_v0, 16  ;;  %2650 = vmatmul.msk.bf16.gmra.mxu0 %vm1532_vm4, %v1497_v30  ;;  %2726 = vmatmul.msk.bf16.gmra.mxu2 %vm1532_vm4, %v1501_v0  ;;  %v1812_v45 = vshll.u32 %v1503_v39, 16  ;;  %v1806_v53 = vshrl.u32 %v1501_v0, 16 }
 0x150   : > { %v1810_v21 = vrot.slane %v1808_v17, 1  ;;  %v2201_v29 = vpop.f32.mrf.mxu3  ;;  %v1814_v7 = vrot.slane %v1812_v45, 1 }
 0x151   : > { %v2202_v15 = vadd.f32 %v3538_v58, %v2201_v29  ;;  %v2060_v4 = vpop.f32.mrf.mxu2  ;;  %v794_v20 = vpop.permute.xlu2 %793 }
 0x152   : > { %v2061_v8 = vadd.f32 %v3538_v58, %v2060_v4  ;;  %v1927_v44 = vpop.f32.mrf.mxu1  ;;  %v1811_v10 = vor.u32 %v1810_v21, %v1806_v53  ;;  %v1373_v21 = vsel %vm1313_vm1, %v3405_v12, %v794_v20 }
 0x153   : > { %2790 = vst.msk [vmem:[%s3545_s9 + $0x328] sm:$0xff] %vm1313_vm1, %v2202_v15  ;;  %v1928_v48 = vadd.f32 %v3538_v58, %v1927_v44  ;;  %v1591_v1 = vpop.f32.mrf.mxu0  ;;  %v992_v41 = vpop.permute.xlu1 %991 }
 0x154   : > { %2737 = vst.msk [vmem:[%s3545_s9 + $0x230] sm:$0xff] %vm1313_vm1, %v2061_v8  ;;  %v1592_v49 = vadd.f32 %v3538_v58, %v1591_v1  ;;  %v788_v22 = vpop.permute.xlu0 %787  ;;  %v1815_v25 = vsel %vm496_vm0, %v1811_v10, %v1814_v7 }
 0x155   : > { %2683 = vst.msk [vmem:[%s3545_s9 + $0x130] sm:$0xff] %vm1313_vm1, %v1928_v48  ;;  %2672 = vmatmul.msk.bf16.gmra.mxu1 %vm1532_vm4, %v1805_v23  ;;  %2780 = vmatmul.msk.bf16.gmra.mxu3 %vm1532_vm4, %v1815_v25  ;;  %v1367_v30 = vsel %vm1313_vm1, %v3353_v59, %v788_v22 }
 0x156   : > { %1661 = vst.msk [vmem:[%s3545_s9 + $0x38] sm:$0xff] %vm1313_vm1, %v1592_v49  ;;  %v1436_v40 = vsel %vm1382_vm2, %v1367_v30, %v992_v41 }
 0x158   : > { %v2204_v27 = vpop.f32.mrf.mxu3 }
 0x159   : > { %v2205_v31 = vadd.f32 %v3538_v58, %v2204_v27  ;;  %v2062_v14 = vpop.f32.mrf.mxu2  ;;  %v1304_v57 = vpop.permute.xlu2 %1303 }
 0x15a   : > { %v2063_v33 = vadd.f32 %v3538_v58, %v2062_v14  ;;  %v1929_v52 = vpop.f32.mrf.mxu1 }
 0x15b   : > { %2791 = vst.msk [vmem:[%s3545_s9 + $0x330] sm:$0xff] %vm1313_vm1, %v2205_v31  ;;  %v1930_v34 = vadd.f32 %v3538_v58, %v1929_v52  ;;  %v1594_v24 = vpop.f32.mrf.mxu0  ;;  %v994_v35 = vpop.permute.xlu1 %993 }
 0x15c   : > { %2738 = vst.msk [vmem:[%s3545_s9 + $0x238] sm:$0xff] %vm1313_vm1, %v2063_v33  ;;  %v1595_v59 = vadd.f32 %v3538_v58, %v1594_v24  ;;  %v1298_v43 = vpop.permute.xlu0 %1297  ;;  %v1438_v54 = vsel %vm1382_vm2, %v1369_v38, %v994_v35 }
 0x15d   : > { %2684 = vst.msk [vmem:[%s3545_s9 + $0x138] sm:$0xff] %vm1313_vm1, %v1930_v34  ;;  %v1505_v28 = vsel %vm1451_vm3, %v1436_v40, %v1298_v43  ;;  %v1507_v13 = vsel %vm1451_vm3, %v1438_v54, %v1300_v2 }
 0x15e   : > { %1662 = vst.msk [vmem:[%s3545_s9 + $0x40] sm:$0xff] %vm1313_vm1, %v1595_v59  ;;  %v1818_v60 = vshll.u32 %v1505_v28, 16  ;;  %2651 = vmatmul.msk.bf16.gmra.mxu0 %vm1532_vm4, %v1501_v0  ;;  %2727 = vmatmul.msk.bf16.gmra.mxu2 %vm1532_vm4, %v1505_v28  ;;  %v1822_v16 = vshll.u32 %v1507_v13, 16  ;;  %v1816_v19 = vshrl.u32 %v1505_v28, 16 }
 0x160   : > { %v1820_v47 = vrot.slane %v1818_v60, 1  ;;  %v2206_v23 = vpop.f32.mrf.mxu3  ;;  %v1824_v3 = vrot.slane %v1822_v16, 1 }
 0x161   : > { %v2207_v26 = vadd.f32 %v3538_v58, %v2206_v23  ;;  %v2065_v36 = vpop.f32.mrf.mxu2  ;;  %v798_v44 = vpop.permute.xlu2 %797 }
 0x162   : > { %v1821_v55 = vor.u32 %v1820_v47, %v1816_v19  ;;  %v2066_v18 = vadd.f32 %v3538_v58, %v2065_v36  ;;  %v1932_v9 = vpop.f32.mrf.mxu1  ;;  %v1377_v19 = vsel %vm1313_vm1, %v3449_v37, %v798_v44 }
 0x163   : > { %2792 = vst.msk [vmem:[%s3545_s9 + $0x338] sm:$0xff] %vm1313_vm1, %v2207_v26  ;;  %v1933_v61 = vadd.f32 %v3538_v58, %v1932_v9  ;;  %v1596_v42 = vpop.f32.mrf.mxu0  ;;  %v996_v56 = vpop.permute.xlu1 %995 }
 0x164   : > { %2739 = vst.msk [vmem:[%s3545_s9 + $0x240] sm:$0xff] %vm1313_vm1, %v2066_v18  ;;  %v1597_v11 = vadd.f32 %v3538_v58, %v1596_v42  ;;  %v792_v62 = vpop.permute.xlu0 %791  ;;  %v1825_v5 = vsel %vm496_vm0, %v1821_v55, %v1824_v3 }
 0x165   : > { %2685 = vst.msk [vmem:[%s3545_s9 + $0x140] sm:$0xff] %vm1313_vm1, %v1933_v61  ;;  %2673 = vmatmul.msk.bf16.gmra.mxu1 %vm1532_vm4, %v1815_v25  ;;  %2781 = vmatmul.msk.bf16.gmra.mxu3 %vm1532_vm4, %v1825_v5  ;;  %v1371_v32 = vsel %vm1313_vm1, %v3397_v6, %v792_v62 }
 0x166   : > { %1663 = vst.msk [vmem:[%s3545_s9 + $0x48] sm:$0xff] %vm1313_vm1, %v1597_v11  ;;  %v1440_v7 = vsel %vm1382_vm2, %v1371_v32, %v996_v56 }
 0x168   : > { %v2209_v50 = vpop.f32.mrf.mxu3 }
 0x169   : > { %v2210_v0 = vadd.f32 %v3538_v58, %v2209_v50  ;;  %v2067_v17 = vpop.f32.mrf.mxu2  ;;  %v1308_v59 = vpop.permute.xlu2 %1307 }
 0x16a   : > { %v2068_v39 = vadd.f32 %v3538_v58, %v2067_v17  ;;  %v1934_v45 = vpop.f32.mrf.mxu1 }
 0x16b   : > { %2793 = vst.msk [vmem:[%s3545_s9 + $0x340] sm:$0xff] %vm1313_vm1, %v2210_v0  ;;  %v1935_v2 = vadd.f32 %v3538_v58, %v1934_v45  ;;  %v1599_v53 = vpop.f32.mrf.mxu0  ;;  %v998_v6 = vpop.permute.xlu1 %997 }
 0x16c   : > { %2740 = vst.msk [vmem:[%s3545_s9 + $0x248] sm:$0xff] %vm1313_vm1, %v2068_v39  ;;  %v1600_v29 = vadd.f32 %v3538_v58, %v1599_v53  ;;  %v1302_v15 = vpop.permute.xlu0 %1301  ;;  %v1442_v4 = vsel %vm1382_vm2, %v1373_v21, %v998_v6 }
 0x16d   : > { %2686 = vst.msk [vmem:[%s3545_s9 + $0x148] sm:$0xff] %vm1313_vm1, %v1935_v2  ;;  %v1509_v8 = vsel %vm1451_vm3, %v1440_v7, %v1302_v15  ;;  %v1511_v12 = vsel %vm1451_vm3, %v1442_v4, %v1304_v57 }
 0x16e   : > { %1664 = vst.msk [vmem:[%s3545_s9 + $0x50] sm:$0xff] %vm1313_vm1, %v1600_v29  ;;  %v1828_v10 = vshll.u32 %v1509_v8, 16  ;;  %2652 = vmatmul.msk.bf16.gmra.mxu0 %vm1532_vm4, %v1505_v28  ;;  %2728 = vmatmul.msk.bf16.gmra.mxu2 %vm1532_vm4, %v1509_v8  ;;  %v1832_v48 = vshll.u32 %v1511_v12, 16  ;;  %v1826_v1 = vshrl.u32 %v1509_v8, 16 }
 0x170   : > { %v1830_v49 = vrot.slane %v1828_v10, 1  ;;  %v2211_v41 = vpop.f32.mrf.mxu3  ;;  %v1834_v22 = vrot.slane %v1832_v48, 1 }
 0x171   : > { %v2212_v25 = vadd.f32 %v3538_v58, %v2211_v41  ;;  %v2070_v27 = vpop.f32.mrf.mxu2  ;;  %v802_v62 = vpop.permute.xlu2 %801 }
 0x172   : > { %v1831_v30 = vor.u32 %v1830_v49, %v1826_v1  ;;  %v2071_v31 = vadd.f32 %v3538_v58, %v2070_v27  ;;  %v1937_v14 = vpop.f32.mrf.mxu1  ;;  %v1381_v12 = vsel %vm1313_vm1, %v3493_v63, %v802_v62 }
 0x173   : > { %2794 = vst.msk [vmem:[%s3545_s9 + $0x348] sm:$0xff] %vm1313_vm1, %v2212_v25  ;;  %v1938_v20 = vadd.f32 %v3538_v58, %v1937_v14  ;;  %v1601_v33 = vpop.f32.mrf.mxu0  ;;  %v1000_v34 = vpop.permute.xlu1 %999 }
 0x174   : > { %2741 = vst.msk [vmem:[%s3545_s9 + $0x250] sm:$0xff] %vm1313_vm1, %v2071_v31  ;;  %v1602_v52 = vadd.f32 %v3538_v58, %v1601_v33  ;;  %v796_v24 = vpop.permute.xlu0 %795  ;;  %v1835_v38 = vsel %vm496_vm0, %v1831_v30, %v1834_v22 }
 0x175   : > { %2687 = vst.msk [vmem:[%s3545_s9 + $0x150] sm:$0xff] %vm1313_vm1, %v1938_v20  ;;  %2674 = vmatmul.msk.bf16.gmra.mxu1 %vm1532_vm4, %v1825_v5  ;;  %2782 = vmatmul.msk.bf16.gmra.mxu3 %vm1532_vm4, %v1835_v38  ;;  %v1375_v40 = vsel %vm1313_vm1, %v3441_v51, %v796_v24 }
 0x176   : > { %1665 = vst.msk [vmem:[%s3545_s9 + $0x58] sm:$0xff] %vm1313_vm1, %v1602_v52  ;;  %v1444_v23 = vsel %vm1382_vm2, %v1375_v40, %v1000_v34 }
 0x178   : > { %v2214_v35 = vpop.f32.mrf.mxu3 }
 0x179   : > { %v2215_v43 = vadd.f32 %v3538_v58, %v2214_v35  ;;  %v2072_v54 = vpop.f32.mrf.mxu2  ;;  %v1312_v10 = vpop.permute.xlu2 %1311 }
 0x17a   : > { %v2073_v28 = vadd.f32 %v3538_v58, %v2072_v54  ;;  %v1939_v60 = vpop.f32.mrf.mxu1 }
 0x17b   : > { %2795 = vst.msk [vmem:[%s3545_s9 + $0x350] sm:$0xff] %vm1313_vm1, %v2215_v43  ;;  %v1940_v13 = vadd.f32 %v3538_v58, %v1939_v60  ;;  %v1604_v16 = vpop.f32.mrf.mxu0  ;;  %v1002_v51 = vpop.permute.xlu1 %1001 }
 0x17c   : > { %2742 = vst.msk [vmem:[%s3545_s9 + $0x258] sm:$0xff] %vm1313_vm1, %v2073_v28  ;;  %v1605_v47 = vadd.f32 %v3538_v58, %v1604_v16  ;;  %v1306_v3 = vpop.permute.xlu0 %1305  ;;  %v1446_v26 = vsel %vm1382_vm2, %v1377_v19, %v1002_v51 }
 0x17d   : > { %2688 = vst.msk [vmem:[%s3545_s9 + $0x158] sm:$0xff] %vm1313_vm1, %v1940_v13  ;;  %v1513_v36 = vsel %vm1451_vm3, %v1444_v23, %v1306_v3  ;;  %v1515_v37 = vsel %vm1451_vm3, %v1446_v26, %v1308_v59 }
 0x17e   : > { %1666 = vst.msk [vmem:[%s3545_s9 + $0x60] sm:$0xff] %vm1313_vm1, %v1605_v47  ;;  %v1838_v55 = vshll.u32 %v1513_v36, 16  ;;  %2653 = vmatmul.msk.bf16.gmra.mxu0 %vm1532_vm4, %v1509_v8  ;;  %2729 = vmatmul.msk.bf16.gmra.mxu2 %vm1532_vm4, %v1513_v36  ;;  %v1842_v18 = vshll.u32 %v1515_v37, 16  ;;  %v1836_v9 = vshrl.u32 %v1513_v36, 16 }
 0x180   : > { %v1840_v61 = vrot.slane %v1838_v55, 1  ;;  %v2216_v42 = vpop.f32.mrf.mxu3  ;;  %v1844_v57 = vrot.slane %v1842_v18, 1 }
 0x181   : > { %v2217_v11 = vadd.f32 %v3538_v58, %v2216_v42  ;;  %v2075_v56 = vpop.f32.mrf.mxu2 }
 0x182   : > { %v1841_v5 = vor.u32 %v1840_v61, %v1836_v9  ;;  %v2076_v50 = vadd.f32 %v3538_v58, %v2075_v56  ;;  %v1942_v32 = vpop.f32.mrf.mxu1 }
 0x183   : > { %2796 = vst.msk [vmem:[%s3545_s9 + $0x358] sm:$0xff] %vm1313_vm1, %v2217_v11  ;;  %v1943_v0 = vadd.f32 %v3538_v58, %v1942_v32  ;;  %v1606_v17 = vpop.f32.mrf.mxu0  ;;  %v1004_v45 = vpop.permute.xlu1 %1003 }
 0x184   : > { %2743 = vst.msk [vmem:[%s3545_s9 + $0x260] sm:$0xff] %vm1313_vm1, %v2076_v50  ;;  %v1607_v39 = vadd.f32 %v3538_v58, %v1606_v17  ;;  %v800_v2 = vpop.permute.xlu0 %799  ;;  %v1845_v53 = vsel %vm496_vm0, %v1841_v5, %v1844_v57 }
 0x185   : > { %2689 = vst.msk [vmem:[%s3545_s9 + $0x160] sm:$0xff] %vm1313_vm1, %v1943_v0  ;;  %2675 = vmatmul.msk.bf16.gmra.mxu1 %vm1532_vm4, %v1835_v38  ;;  %2783 = vmatmul.msk.bf16.gmra.mxu3 %vm1532_vm4, %v1845_v53  ;;  %v1379_v29 = vsel %vm1313_vm1, %v3485_v46, %v800_v2 }
 0x186   : > { %1667 = vst.msk [vmem:[%s3545_s9 + $0x68] sm:$0xff] %vm1313_vm1, %v1607_v39  ;;  %v1448_v1 = vsel %vm1382_vm2, %v1379_v29, %v1004_v45 }
 0x188   : > { %v2219_v21 = vpop.f32.mrf.mxu3 }
 0x189   : > { %v2220_v6 = vadd.f32 %v3538_v58, %v2219_v21  ;;  %v2077_v7 = vpop.f32.mrf.mxu2 }
 0x18a   : > { %v2078_v15 = vadd.f32 %v3538_v58, %v2077_v7  ;;  %v1944_v4 = vpop.f32.mrf.mxu1 }
 0x18b   : > { %2797 = vst.msk [vmem:[%s3545_s9 + $0x360] sm:$0xff] %vm1313_vm1, %v2220_v6  ;;  %v1945_v8 = vadd.f32 %v3538_v58, %v1944_v4  ;;  %v1609_v44 = vpop.f32.mrf.mxu0  ;;  %v1006_v48 = vpop.permute.xlu1 %1005 }
 0x18c   : > { %2744 = vst.msk [vmem:[%s3545_s9 + $0x268] sm:$0xff] %vm1313_vm1, %v2078_v15  ;;  %v1610_v46 = vadd.f32 %v3538_v58, %v1609_v44  ;;  %v1310_v49 = vpop.permute.xlu0 %1309  ;;  %v1450_v41 = vsel %vm1382_vm2, %v1381_v12, %v1006_v48 }
 0x18d   : > { %2690 = vst.msk [vmem:[%s3545_s9 + $0x168] sm:$0xff] %vm1313_vm1, %v1945_v8  ;;  %v1517_v22 = vsel %vm1451_vm3, %v1448_v1, %v1310_v49  ;;  %v1519_v63 = vsel %vm1451_vm3, %v1450_v41, %v1312_v10 }
 0x18e   : > { %1668 = vst.msk [vmem:[%s3545_s9 + $0x70] sm:$0xff] %vm1313_vm1, %v1610_v46  ;;  %v2160_v25 = vshll.u32 %v1517_v22, 16  ;;  %2654 = vmatmul.msk.bf16.gmra.mxu0 %vm1532_vm4, %v1513_v36  ;;  %2730 = vmatmul.msk.bf16.gmra.mxu2 %vm1532_vm4, %v1517_v22  ;;  %v2164_v27 = vshll.u32 %v1519_v63, 16  ;;  %v2158_v30 = vshrl.u32 %v1517_v22, 16 }
 0x190   : > { %v2162_v31 = vrot.slane %v2160_v25, 1  ;;  %v2221_v14 = vpop.f32.mrf.mxu3  ;;  %v2166_v20 = vrot.slane %v2164_v27, 1 }
 0x191   : > { %v2222_v33 = vadd.f32 %v3538_v58, %v2221_v14  ;;  %v2080_v52 = vpop.f32.mrf.mxu2 }
 0x192   : > { %v2163_v34 = vor.u32 %v2162_v31, %v2158_v30  ;;  %v2081_v24 = vadd.f32 %v3538_v58, %v2080_v52  ;;  %v1947_v38 = vpop.f32.mrf.mxu1 }
 0x193   : > { %2798 = vst.msk [vmem:[%s3545_s9 + $0x368] sm:$0xff] %vm1313_vm1, %v2222_v33  ;;  %v1948_v59 = vadd.f32 %v3538_v58, %v1947_v38  ;;  %v1611_v35 = vpop.f32.mrf.mxu0 }
 0x194   : > { %2745 = vst.msk [vmem:[%s3545_s9 + $0x270] sm:$0xff] %vm1313_vm1, %v2081_v24  ;;  %v1612_v40 = vadd.f32 %v3538_v58, %v1611_v35  ;;  %v2167_v43 = vsel %vm496_vm0, %v2163_v34, %v2166_v20 }
 0x195   : > { %2691 = vst.msk [vmem:[%s3545_s9 + $0x170] sm:$0xff] %vm1313_vm1, %v1948_v59  ;;  %2676 = vmatmul.msk.bf16.gmra.mxu1 %vm1532_vm4, %v1845_v53  ;;  %2784 = vmatmul.msk.bf16.gmra.mxu3 %vm1532_vm4, %v2167_v43 }
 0x196   : > { %1669 = vst.msk [vmem:[%s3545_s9 + $0x78] sm:$0xff] %vm1313_vm1, %v1612_v40 }
 0x198   : > { %v2224_v54 = vpop.f32.mrf.mxu3 }
 0x199   : > { %v2225_v28 = vadd.f32 %v3538_v58, %v2224_v54  ;;  %v2082_v60 = vpop.f32.mrf.mxu2 }
 0x19a   : > { %v2083_v13 = vadd.f32 %v3538_v58, %v2082_v60  ;;  %v1949_v16 = vpop.f32.mrf.mxu1 }
 0x19b   : > { %2799 = vst.msk [vmem:[%s3545_s9 + $0x370] sm:$0xff] %vm1313_vm1, %v2225_v28  ;;  %v1950_v19 = vadd.f32 %v3538_v58, %v1949_v16  ;;  %v1614_v47 = vpop.f32.mrf.mxu0 }
 0x19c   : > { %2746 = vst.msk [vmem:[%s3545_s9 + $0x278] sm:$0xff] %vm1313_vm1, %v2083_v13  ;;  %v1615_v51 = vadd.f32 %v3538_v58, %v1614_v47 }
 0x19d   : > { %2692 = vst.msk [vmem:[%s3545_s9 + $0x178] sm:$0xff] %vm1313_vm1, %v1950_v19 }
 0x19e   : > { %1670 = vst.msk [vmem:[%s3545_s9 + $0x80] sm:$0xff] %vm1313_vm1, %v1615_v51 }
 0x1a0   : > { %v2226_v23 = vpop.f32.mrf.mxu3 }
 0x1a1   : > { %v2227_v3 = vadd.f32 %v3538_v58, %v2226_v23  ;;  %v2085_v26 = vpop.f32.mrf.mxu2 }
 0x1a2   : > { %v2086_v36 = vadd.f32 %v3538_v58, %v2085_v26  ;;  %v1952_v55 = vpop.f32.mrf.mxu1 }
 0x1a3   : > { %2800 = vst.msk [vmem:[%s3545_s9 + $0x378] sm:$0xff] %vm1313_vm1, %v2227_v3  ;;  %v1953_v37 = vadd.f32 %v3538_v58, %v1952_v55  ;;  %v1616_v18 = vpop.f32.mrf.mxu0 }
 0x1a4   : > { %2747 = vst.msk [vmem:[%s3545_s9 + $0x280] sm:$0xff] %vm1313_vm1, %v2086_v36  ;;  %v1617_v9 = vadd.f32 %v3538_v58, %v1616_v18 }
 0x1a5   : > { %2693 = vst.msk [vmem:[%s3545_s9 + $0x180] sm:$0xff] %vm1313_vm1, %v1953_v37 }
 0x1a6   : > { %1671 = vst.msk [vmem:[%s3545_s9 + $0x88] sm:$0xff] %vm1313_vm1, %v1617_v9 }
 0x1a8   : > { %v2229_v61 = vpop.f32.mrf.mxu3 }
 0x1a9   : > { %v2230_v42 = vadd.f32 %v3538_v58, %v2229_v61  ;;  %v2087_v57 = vpop.f32.mrf.mxu2 }
 0x1aa   : > { %v2088_v11 = vadd.f32 %v3538_v58, %v2087_v57  ;;  %v1954_v56 = vpop.f32.mrf.mxu1 }
 0x1ab   : > { %2801 = vst.msk [vmem:[%s3545_s9 + $0x380] sm:$0xff] %vm1313_vm1, %v2230_v42  ;;  %v1955_v62 = vadd.f32 %v3538_v58, %v1954_v56  ;;  %v1619_v5 = vpop.f32.mrf.mxu0 }
 0x1ac   : > { %2748 = vst.msk [vmem:[%s3545_s9 + $0x288] sm:$0xff] %vm1313_vm1, %v2088_v11  ;;  %v1620_v50 = vadd.f32 %v3538_v58, %v1619_v5 }
 0x1ad   : > { %2694 = vst.msk [vmem:[%s3545_s9 + $0x188] sm:$0xff] %vm1313_vm1, %v1955_v62 }
 0x1ae   : > { %1672 = vst.msk [vmem:[%s3545_s9 + $0x90] sm:$0xff] %vm1313_vm1, %v1620_v50 }
 0x1b0   : > { %v2231_v32 = vpop.f32.mrf.mxu3 }
 0x1b1   : > { %v2232_v0 = vadd.f32 %v3538_v58, %v2231_v32  ;;  %v2090_v17 = vpop.f32.mrf.mxu2 }
 0x1b2   : > { %v2091_v39 = vadd.f32 %v3538_v58, %v2090_v17  ;;  %v1957_v45 = vpop.f32.mrf.mxu1 }
 0x1b3   : > { %2802 = vst.msk [vmem:[%s3545_s9 + $0x388] sm:$0xff] %vm1313_vm1, %v2232_v0  ;;  %v1958_v2 = vadd.f32 %v3538_v58, %v1957_v45  ;;  %v1621_v53 = vpop.f32.mrf.mxu0 }
 0x1b4   : > { %2749 = vst.msk [vmem:[%s3545_s9 + $0x290] sm:$0xff] %vm1313_vm1, %v2091_v39  ;;  %v1622_v21 = vadd.f32 %v3538_v58, %v1621_v53 }
 0x1b5   : > { %2695 = vst.msk [vmem:[%s3545_s9 + $0x190] sm:$0xff] %vm1313_vm1, %v1958_v2 }
 0x1b6   : > { %1673 = vst.msk [vmem:[%s3545_s9 + $0x98] sm:$0xff] %vm1313_vm1, %v1622_v21 }
 0x1b8   : > { %v2234_v29 = vpop.f32.mrf.mxu3 }
 0x1b9   : > { %v2235_v6 = vadd.f32 %v3538_v58, %v2234_v29  ;;  %v2092_v7 = vpop.f32.mrf.mxu2 }
 0x1ba   : > { %v2093_v15 = vadd.f32 %v3538_v58, %v2092_v7  ;;  %v1959_v4 = vpop.f32.mrf.mxu1  ;;  %v2887_v7 = vld [vmem:[%s4041_s2] ss:$0 sm:$0xff] }
 0x1bb   : > { %2803 = vst.msk [vmem:[%s3545_s9 + $0x390] sm:$0xff] %vm1313_vm1, %v2235_v6  ;;  %v1960_v8 = vadd.f32 %v3538_v58, %v1959_v4  ;;  %v1624_v44 = vpop.f32.mrf.mxu0 }
 0x1bc   : > { %2750 = vst.msk [vmem:[%s3545_s9 + $0x298] sm:$0xff] %vm1313_vm1, %v2093_v15  ;;  %v1625_v10 = vadd.f32 %v3538_v58, %v1624_v44 }
 0x1bd   : > { %2696 = vst.msk [vmem:[%s3545_s9 + $0x198] sm:$0xff] %vm1313_vm1, %v1960_v8 }
 0x1be   : > { %1674 = vst.msk [vmem:[%s3545_s9 + $0xa0] sm:$0xff] %vm1313_vm1, %v1625_v10 }
 0x1c0   : > { %v2236_v12 = vpop.f32.mrf.mxu3 }
 0x1c1   : > { %v2237_v46 = vadd.f32 %v3538_v58, %v2236_v12  ;;  %v2095_v48 = vpop.f32.mrf.mxu2 }
 0x1c2   : > { %v2096_v1 = vadd.f32 %v3538_v58, %v2095_v48  ;;  %v1962_v49 = vpop.f32.mrf.mxu1 }
 0x1c3   : > { %2804 = vst.msk [vmem:[%s3545_s9 + $0x398] sm:$0xff] %vm1313_vm1, %v2237_v46  ;;  %v1963_v41 = vadd.f32 %v3538_v58, %v1962_v49  ;;  %v1626_v22 = vpop.f32.mrf.mxu0 }
 0x1c4   : > { %2751 = vst.msk [vmem:[%s3545_s9 + $0x2a0] sm:$0xff] %vm1313_vm1, %v2096_v1  ;;  %v1627_v25 = vadd.f32 %v3538_v58, %v1626_v22 }
 0x1c5   : > { %2697 = vst.msk [vmem:[%s3545_s9 + $0x1a0] sm:$0xff] %vm1313_vm1, %v1963_v41 }
 0x1c6   : > { %1675 = vst.msk [vmem:[%s3545_s9 + $0xa8] sm:$0xff] %vm1313_vm1, %v1627_v25 }
 0x1c8   : > { %v2239_v63 = vpop.f32.mrf.mxu3 }
 0x1c9   : > { %v2240_v27 = vadd.f32 %v3538_v58, %v2239_v63  ;;  %v2097_v30 = vpop.f32.mrf.mxu2 }
 0x1ca   : > { %v2098_v31 = vadd.f32 %v3538_v58, %v2097_v30  ;;  %v1964_v14 = vpop.f32.mrf.mxu1 }
 0x1cb   : > { %2805 = vst.msk [vmem:[%s3545_s9 + $0x3a0] sm:$0xff] %vm1313_vm1, %v2240_v27  ;;  %v1965_v20 = vadd.f32 %v3538_v58, %v1964_v14  ;;  %v1629_v33 = vpop.f32.mrf.mxu0 }
 0x1cc   : > { %2752 = vst.msk [vmem:[%s3545_s9 + $0x2a8] sm:$0xff] %vm1313_vm1, %v2098_v31  ;;  %v1630_v52 = vadd.f32 %v3538_v58, %v1629_v33 }
 0x1cd   : > { %2698 = vst.msk [vmem:[%s3545_s9 + $0x1a8] sm:$0xff] %vm1313_vm1, %v1965_v20 }
 0x1ce   : > { %1676 = vst.msk [vmem:[%s3545_s9 + $0xb0] sm:$0xff] %vm1313_vm1, %v1630_v52 }
 0x1d0   : > { %v2241_v34 = vpop.f32.mrf.mxu3 }
 0x1d1   : > { %v2242_v24 = vadd.f32 %v3538_v58, %v2241_v34  ;;  %v2100_v38 = vpop.f32.mrf.mxu2 }
 0x1d2   : > { %v2101_v59 = vadd.f32 %v3538_v58, %v2100_v38  ;;  %v1967_v35 = vpop.f32.mrf.mxu1 }
 0x1d3   : > { %2806 = vst.msk [vmem:[%s3545_s9 + $0x3a8] sm:$0xff] %vm1313_vm1, %v2242_v24  ;;  %v1968_v40 = vadd.f32 %v3538_v58, %v1967_v35  ;;  %v1631_v43 = vpop.f32.mrf.mxu0 }
 0x1d4   : > { %2753 = vst.msk [vmem:[%s3545_s9 + $0x2b0] sm:$0xff] %vm1313_vm1, %v2101_v59  ;;  %v1632_v54 = vadd.f32 %v3538_v58, %v1631_v43 }
 0x1d5   : > { %2699 = vst.msk [vmem:[%s3545_s9 + $0x1b0] sm:$0xff] %vm1313_vm1, %v1968_v40 }
 0x1d6   : > { %1677 = vst.msk [vmem:[%s3545_s9 + $0xb8] sm:$0xff] %vm1313_vm1, %v1632_v54 }
 0x1d8   : > { %v2244_v28 = vpop.f32.mrf.mxu3 }
 0x1d9   : > { %v2245_v60 = vadd.f32 %v3538_v58, %v2244_v28  ;;  %v2102_v13 = vpop.f32.mrf.mxu2 }
 0x1da   : > { %v2103_v16 = vadd.f32 %v3538_v58, %v2102_v13  ;;  %v1969_v19 = vpop.f32.mrf.mxu1 }
 0x1db   : > { %2807 = vst.msk [vmem:[%s3545_s9 + $0x3b0] sm:$0xff] %vm1313_vm1, %v2245_v60  ;;  %v1970_v47 = vadd.f32 %v3538_v58, %v1969_v19  ;;  %v1634_v51 = vpop.f32.mrf.mxu0 }
 0x1dc   : > { %2754 = vst.msk [vmem:[%s3545_s9 + $0x2b8] sm:$0xff] %vm1313_vm1, %v2103_v16  ;;  %v1635_v23 = vadd.f32 %v3538_v58, %v1634_v51 }
 0x1dd   : > { %2700 = vst.msk [vmem:[%s3545_s9 + $0x1b8] sm:$0xff] %vm1313_vm1, %v1970_v47 }
 0x1de   : > { %1678 = vst.msk [vmem:[%s3545_s9 + $0xc0] sm:$0xff] %vm1313_vm1, %v1635_v23 }
 0x1e0   : > { %v2246_v3 = vpop.f32.mrf.mxu3 }
 0x1e1   : > { %v2247_v26 = vadd.f32 %v3538_v58, %v2246_v3  ;;  %v2105_v36 = vpop.f32.mrf.mxu2 }
 0x1e2   : > { %v2106_v55 = vadd.f32 %v3538_v58, %v2105_v36  ;;  %v1972_v37 = vpop.f32.mrf.mxu1 }
 0x1e3   : > { %2808 = vst.msk [vmem:[%s3545_s9 + $0x3b8] sm:$0xff] %vm1313_vm1, %v2247_v26  ;;  %v1973_v18 = vadd.f32 %v3538_v58, %v1972_v37  ;;  %v1636_v9 = vpop.f32.mrf.mxu0 }
 0x1e4   : > { %2755 = vst.msk [vmem:[%s3545_s9 + $0x2c0] sm:$0xff] %vm1313_vm1, %v2106_v55  ;;  %v1637_v61 = vadd.f32 %v3538_v58, %v1636_v9 }
 0x1e5   : > { %2701 = vst.msk [vmem:[%s3545_s9 + $0x1c0] sm:$0xff] %vm1313_vm1, %v1973_v18 }
 0x1e6   : > { %1679 = vst.msk [vmem:[%s3545_s9 + $0xc8] sm:$0xff] %vm1313_vm1, %v1637_v61 }
 0x1e8   : > { %v2249_v42 = vpop.f32.mrf.mxu3 }
 0x1e9   : > { %v2250_v57 = vadd.f32 %v3538_v58, %v2249_v42  ;;  %v2107_v11 = vpop.f32.mrf.mxu2 }
 0x1ea   : > { %v2108_v56 = vadd.f32 %v3538_v58, %v2107_v11  ;;  %v1974_v62 = vpop.f32.mrf.mxu1 }
 0x1eb   : > { %2809 = vst.msk [vmem:[%s3545_s9 + $0x3c0] sm:$0xff] %vm1313_vm1, %v2250_v57  ;;  %v1975_v5 = vadd.f32 %v3538_v58, %v1974_v62  ;;  %v1639_v50 = vpop.f32.mrf.mxu0 }
 0x1ec   : > { %2756 = vst.msk [vmem:[%s3545_s9 + $0x2c8] sm:$0xff] %vm1313_vm1, %v2108_v56  ;;  %v1640_v32 = vadd.f32 %v3538_v58, %v1639_v50 }
 0x1ed   : > { %2702 = vst.msk [vmem:[%s3545_s9 + $0x1c8] sm:$0xff] %vm1313_vm1, %v1975_v5 }
 0x1ee   : > { %1680 = vst.msk [vmem:[%s3545_s9 + $0xd0] sm:$0xff] %vm1313_vm1, %v1640_v32 }
 0x1f0   : > { %v2251_v0 = vpop.f32.mrf.mxu3 }
 0x1f1   : > { %v2252_v17 = vadd.f32 %v3538_v58, %v2251_v0  ;;  %v2110_v39 = vpop.f32.mrf.mxu2 }
 0x1f2   : > { %v2111_v45 = vadd.f32 %v3538_v58, %v2110_v39  ;;  %v1977_v2 = vpop.f32.mrf.mxu1 }
 0x1f3   : > { %2810 = vst.msk [vmem:[%s3545_s9 + $0x3c8] sm:$0xff] %vm1313_vm1, %v2252_v17  ;;  %v1978_v53 = vadd.f32 %v3538_v58, %v1977_v2  ;;  %v1641_v21 = vpop.f32.mrf.mxu0 }
 0x1f4   : > { %2757 = vst.msk [vmem:[%s3545_s9 + $0x2d0] sm:$0xff] %vm1313_vm1, %v2111_v45  ;;  %v1642_v29 = vadd.f32 %v3538_v58, %v1641_v21 }
 0x1f5   : > { %2703 = vst.msk [vmem:[%s3545_s9 + $0x1d0] sm:$0xff] %vm1313_vm1, %v1978_v53 }
 0x1f6   : > { %1681 = vst.msk [vmem:[%s3545_s9 + $0xd8] sm:$0xff] %vm1313_vm1, %v1642_v29 }
 0x1f8   : > { %v2254_v6 = vpop.f32.mrf.mxu3 }
 0x1f9   : > { %v2255_v15 = vadd.f32 %v2887_v7, %v2254_v6  ;;  %v2112_v4 = vpop.f32.mrf.mxu2 }
 0x1fa   : > { %v2113_v8 = vadd.f32 %v2887_v7, %v2112_v4  ;;  %v1979_v44 = vpop.f32.mrf.mxu1 }
 0x1fb   : > { %2811 = vst.msk [vmem:[%s3545_s9 + $0x3d0] sm:$0xff] %vm1313_vm1, %v2255_v15  ;;  %v1980_v10 = vadd.f32 %v2887_v7, %v1979_v44  ;;  %v1644_v58 = vpop.f32.mrf.mxu0 }
 0x1fc   : > { %2758 = vst.msk [vmem:[%s3545_s9 + $0x2d8] sm:$0xff] %vm1313_vm1, %v2113_v8  ;;  %v1645_v12 = vadd.f32 %v2887_v7, %v1644_v58 }
 0x1fd   : > { %2704 = vst.msk [vmem:[%s3545_s9 + $0x1d8] sm:$0xff] %vm1313_vm1, %v1980_v10 }
 0x1fe   : > { %1682 = vst.msk [vmem:[%s3545_s9 + $0xe0] sm:$0xff] %vm1313_vm1, %v1645_v12 }
 0x200   : > { %v2256_v46 = vpop.f32.mrf.mxu3 }
 0x201   : > { %v2257_v48 = vadd.f32 %v2887_v7, %v2256_v46  ;;  %v2115_v1 = vpop.f32.mrf.mxu2 }
 0x202   : > { %v2116_v49 = vadd.f32 %v2887_v7, %v2115_v1  ;;  %v1982_v41 = vpop.f32.mrf.mxu1 }
 0x203   : > { %2812 = vst.msk [vmem:[%s3545_s9 + $0x3d8] sm:$0xff] %vm1313_vm1, %v2257_v48  ;;  %v1983_v22 = vadd.f32 %v2887_v7, %v1982_v41  ;;  %v1646_v25 = vpop.f32.mrf.mxu0 }
 0x204   : > { %2759 = vst.msk [vmem:[%s3545_s9 + $0x2e0] sm:$0xff] %vm1313_vm1, %v2116_v49  ;;  %v1647_v63 = vadd.f32 %v2887_v7, %v1646_v25 }
 0x205   : > { %2705 = vst.msk [vmem:[%s3545_s9 + $0x1e0] sm:$0xff] %vm1313_vm1, %v1983_v22 }
 0x206   : > { %1683 = vst.msk [vmem:[%s3545_s9 + $0xe8] sm:$0xff] %vm1313_vm1, %v1647_v63 }
 0x208   : > { %v2259_v27 = vpop.f32.mrf.mxu3 }
 0x209   : > { %v2260_v30 = vadd.f32 %v2887_v7, %v2259_v27  ;;  %v2117_v31 = vpop.f32.mrf.mxu2 }
 0x20a   : > { %v2118_v14 = vadd.f32 %v2887_v7, %v2117_v31  ;;  %v1984_v20 = vpop.f32.mrf.mxu1 }
 0x20b   : > { %2813 = vst.msk [vmem:[%s3545_s9 + $0x3e0] sm:$0xff] %vm1313_vm1, %v2260_v30  ;;  %v1985_v33 = vadd.f32 %v2887_v7, %v1984_v20  ;;  %v1649_v52 = vpop.f32.mrf.mxu0 }
 0x20c   : > { %2760 = vst.msk [vmem:[%s3545_s9 + $0x2e8] sm:$0xff] %vm1313_vm1, %v2118_v14  ;;  %v1650_v34 = vadd.f32 %v2887_v7, %v1649_v52 }
 0x20d   : > { %2706 = vst.msk [vmem:[%s3545_s9 + $0x1e8] sm:$0xff] %vm1313_vm1, %v1985_v33 }
 0x20e   : > { %1684 = vst.msk [vmem:[%s3545_s9 + $0xf0] sm:$0xff] %vm1313_vm1, %v1650_v34 }
 0x210   : > { %v2261_v24 = vpop.f32.mrf.mxu3 }
 0x211   : > { %v2262_v38 = vadd.f32 %v2887_v7, %v2261_v24  ;;  %v2120_v59 = vpop.f32.mrf.mxu2 }
 0x212   : > { %v2121_v35 = vadd.f32 %v2887_v7, %v2120_v59  ;;  %v1987_v40 = vpop.f32.mrf.mxu1 }
 0x213   : > { %2814 = vst.msk [vmem:[%s3545_s9 + $0x3e8] sm:$0xff] %vm1313_vm1, %v2262_v38  ;;  %v1988_v43 = vadd.f32 %v2887_v7, %v1987_v40  ;;  %v1651_v54 = vpop.f32.mrf.mxu0 }
 0x214   : > { %2761 = vst.msk [vmem:[%s3545_s9 + $0x2f0] sm:$0xff] %vm1313_vm1, %v2121_v35  ;;  %v1652_v28 = vadd.f32 %v2887_v7, %v1651_v54 }
 0x215   : > { %2707 = vst.msk [vmem:[%s3545_s9 + $0x1f0] sm:$0xff] %vm1313_vm1, %v1988_v43 }
 0x216   : > { %1685 = vst.msk [vmem:[%s3545_s9 + $0xf8] sm:$0xff] %vm1313_vm1, %v1652_v28 }
 0x218   : > { %v2264_v60 = vpop.f32.mrf.mxu3 }
 0x219   : > { %v2265_v13 = vadd.f32 %v2887_v7, %v2264_v60  ;;  %v2122_v16 = vpop.f32.mrf.mxu2 }
 0x21a   : > { %v2123_v19 = vadd.f32 %v2887_v7, %v2122_v16  ;;  %v1989_v47 = vpop.f32.mrf.mxu1 }
 0x21b   : > { %2815 = vst.msk [vmem:[%s3545_s9 + $0x3f0] sm:$0xff] %vm1313_vm1, %v2265_v13  ;;  %v1990_v51 = vadd.f32 %v2887_v7, %v1989_v47 }
 0x21c   : > { %2762 = vst.msk [vmem:[%s3545_s9 + $0x2f8] sm:$0xff] %vm1313_vm1, %v2123_v19 }
 0x21d   : > { %2708 = vst.msk [vmem:[%s3545_s9 + $0x1f8] sm:$0xff] %vm1313_vm1, %v1990_v51 }
 0x220   : > { %v2266_v23 = vpop.f32.mrf.mxu3 }
 0x221   : > { %v2267_v3 = vadd.f32 %v2887_v7, %v2266_v23 }
 0x223   : > { %2816 = vst.msk [vmem:[%s3545_s9 + $0x3f8] sm:$0xff] %vm1313_vm1, %v2267_v3 }
 0x224 PF: > { %s13_s14 = sadd.s32 1, %s2910_s14   ;;  %s4043_s12 = smov %s2906_s13 }
 0x225   : > { %p10_p5 = scmp.ge.s32.totalorder %s13_s14, 4   ;;  %s4044_s13 = smov %s4046_s15 }
 0x227   :  { %12 = sbr.rel (!%p10_p5) target bundleno = 2 (0x2), region = 75 }

</bundles_post_ra>
